<compile_context>
chip_gen: v7x
topology: tpu7x:2x2x1
jax: 0.10.0
libtpu: 0.0.40
codegen_flags: <defaults>
</compile_context>

<pallas_src>
import jax
import jax.numpy as jnp
from jax.experimental import pallas as pl
from jax.experimental.pallas import tpu as pltpu

_BN_EPS = 1e-5
# Explicit scoped-VMEM cap; leaves headroom below v7x's 64 MiB physical VMEM.
_VMEM_LIMIT = 48 * 1024 * 1024


def _round_up(x, m):
    return (x + m - 1) // m * m


def _row_tile(m):
    """Row tile: large (128-512) for big M, 8-aligned single block for tiny M."""
    if m >= 4096:
        return 512
    if m >= 1024:
        return 256
    if m >= 128:
        return 128
    return _round_up(max(m, 1), 8)


def _pad_channels(c):
    """Pad channel counts to a multiple of 32 so 4*Cp is a multiple of 128."""
    return max(32, _round_up(c, 32))


# ----------------------------- Pallas kernels ------------------------------

def _mm_stats_kernel(a_ref, w_ref, q_ref, s_ref, sq_ref):
    """Matmul tile + fused per-column sum / sum-of-squares (from f32 acc)."""
    acc = jnp.dot(a_ref[...], w_ref[...], preferred_element_type=jnp.float32)
    q_ref[...] = acc.astype(q_ref.dtype)
    s_ref[0] = jnp.sum(acc, axis=0, keepdims=True)
    sq_ref[0] = jnp.sum(acc * acc, axis=0, keepdims=True)


def _mm_tanh_kernel(a_ref, w_ref, o_ref):
    """Matmul tile with tanh fused into the epilogue (final layer)."""
    acc = jnp.dot(a_ref[...], w_ref[...], preferred_element_type=jnp.float32)
    o_ref[...] = jnp.tanh(acc)


def _affine_relu_kernel(x_ref, scale_ref, shift_ref, o_ref):
    """y = relu(x * scale + shift), per-column scale/shift, f32 math."""
    y = x_ref[...].astype(jnp.float32) * scale_ref[...] + shift_ref[...]
    o_ref[...] = jnp.maximum(y, 0.0).astype(o_ref.dtype)


# ----------------------------- Pallas wrappers ------------------------------

def matmul_stats_pallas(a, w):
    """(M,K)@(K,N), bf16 in / f32 acc, bf16 out, fused column stats.

    Returns (q_padded (Mp,N) bf16, col_sum (N,) f32, col_sumsq (N,) f32).
    Padded rows are zero so they contribute nothing to the stats.
    """
    m, k = a.shape
    n = w.shape[1]
    tm = _row_tile(m)
    mp = _round_up(m, tm)
    if mp != m:
        a = jnp.pad(a, ((0, mp - m), (0, 0)))
    grid = mp // tm
    q, s, sq = pl.pallas_call(
        _mm_stats_kernel,
        out_shape=(jax.ShapeDtypeStruct((mp, n), jnp.bfloat16),
                   jax.ShapeDtypeStruct((grid, 1, n), jnp.float32),
                   jax.ShapeDtypeStruct((grid, 1, n), jnp.float32)),
        grid_spec=pltpu.PrefetchScalarGridSpec(
            num_scalar_prefetch=0,
            grid=(grid,),
            in_specs=[pl.BlockSpec((tm, k), lambda i: (i, 0)),
                      pl.BlockSpec((k, n), lambda i: (0, 0))],
            out_specs=(pl.BlockSpec((tm, n), lambda i: (i, 0)),
                       pl.BlockSpec((1, 1, n), lambda i: (i, 0, 0)),
                       pl.BlockSpec((1, 1, n), lambda i: (i, 0, 0)))),
        compiler_params=pltpu.CompilerParams(
            dimension_semantics=("parallel",),
            vmem_limit_bytes=_VMEM_LIMIT),
    )(a, w)
    return q, s.sum(axis=(0, 1)), sq.sum(axis=(0, 1))


def matmul_tanh_pallas(a, w):
    """(M,K)@(K,N) with tanh fused into the epilogue; f32 output (Mp, N)."""
    m, k = a.shape
    n = w.shape[1]
    tm = _row_tile(m)
    mp = _round_up(m, tm)
    if mp != m:
        a = jnp.pad(a, ((0, mp - m), (0, 0)))
    return pl.pallas_call(
        _mm_tanh_kernel,
        out_shape=jax.ShapeDtypeStruct((mp, n), jnp.float32),
        grid_spec=pltpu.PrefetchScalarGridSpec(
            num_scalar_prefetch=0,
            grid=(mp // tm,),
            in_specs=[pl.BlockSpec((tm, k), lambda i: (i, 0)),
                      pl.BlockSpec((k, n), lambda i: (0, 0))],
            out_specs=pl.BlockSpec((tm, n), lambda i: (i, 0))),
        compiler_params=pltpu.CompilerParams(
            dimension_semantics=("parallel",),
            vmem_limit_bytes=_VMEM_LIMIT),
    )(a, w)


def affine_relu_pallas(x, scale, shift):
    """Fused BN-affine + ReLU on a (M, N) matrix; bf16 out."""
    m, n = x.shape
    tm = _row_tile(m)
    assert m % tm == 0, (m, tm)
    scale = scale.reshape(1, n).astype(jnp.float32)
    shift = shift.reshape(1, n).astype(jnp.float32)
    return pl.pallas_call(
        _affine_relu_kernel,
        out_shape=jax.ShapeDtypeStruct((m, n), jnp.bfloat16),
        grid_spec=pltpu.PrefetchScalarGridSpec(
            num_scalar_prefetch=0,
            grid=(m // tm,),
            in_specs=[pl.BlockSpec((tm, n), lambda i: (i, 0)),
                      pl.BlockSpec((1, n), lambda i: (0, 0)),
                      pl.BlockSpec((1, n), lambda i: (0, 0))],
            out_specs=pl.BlockSpec((tm, n), lambda i: (i, 0))),
        compiler_params=pltpu.CompilerParams(
            dimension_semantics=("parallel",),
            vmem_limit_bytes=_VMEM_LIMIT),
    )(x, scale, shift)


# ------------------- phase-decomposed ConvTranspose glue --------------------
# y[b, 2m+r, 2n+s, co] = sum_{dr,dc,ci} xp[b, m+r+dr, n+s+dc, ci]
#                          * W[ci, co, 3-r-2*dr, 3-s-2*dc]
# with xp = zero-pad(x, 1).  All four phases share one patch matrix PP of
# shape (B, H+1, W+1, 4*Cin); one matmul with N = 4*Cout computes them all.

def _phase_patches(x):
    """x: (B, H, W, C) -> (B*(H+1)*(W+1), 4*C) shared phase-patch matrix."""
    b, h, w, c = x.shape
    xp = jnp.pad(x, ((0, 0), (1, 1), (1, 1), (0, 0)))
    taps = [xp[:, dr:dr + h + 1, dc:dc + w + 1, :]
            for dr in (0, 1) for dc in (0, 1)]
    patches = jnp.concatenate(taps, axis=-1)          # (B, H+1, W+1, 4C)
    return patches.reshape(b * (h + 1) * (w + 1), 4 * c)


def _phase_interleave(q, b, h, w, cp):
    """q: (Mp, 4*cp) phase-blocked output -> (B, 2H, 2W, cp) interleaved."""
    q5 = q[:b * (h + 1) * (w + 1)].reshape(b, h + 1, w + 1, 4, cp)

    def slab(r, s):
        return q5[:, r:r + h, s:s + w, 2 * r + s, :]   # (B, H, W, cp)

    t = jnp.stack([jnp.stack([slab(r, 0), slab(r, 1)], axis=3)
                   for r in (0, 1)], axis=2)           # (B, H, 2, W, 2, cp)
    return t.reshape(b, 2 * h, 2 * w, cp)


def _phase_valid_stats(q, col_sum, col_sq, b, h, w, cp):
    """Remove the thin out-of-image ("phantom") boundary entries from the
    fused column stats, then reduce the four phase blocks per channel."""
    q5 = (q[:b * (h + 1) * (w + 1)]
          .reshape(b, h + 1, w + 1, 4, cp).astype(jnp.float32))
    s4 = col_sum.reshape(4, cp)
    q4 = col_sq.reshape(4, cp)
    for r in (0, 1):
        for s in (0, 1):
            p = 2 * r + s
            a_bad = h if r == 0 else 0
            b_bad = w if s == 0 else 0
            row = q5[:, a_bad, :, p, :]                # (B, W+1, cp)
            col = q5[:, :, b_bad, p, :]                # (B, H+1, cp)
            cor = q5[:, a_bad, b_bad, p, :]            # (B, cp)
            bad_s = row.sum((0, 1)) + col.sum((0, 1)) - cor.sum(0)
            bad_q = ((row * row).sum((0, 1)) + (col * col).sum((0, 1))
                     - (cor * cor).sum(0))
            s4 = s4.at[p].add(-bad_s)
            q4 = q4.at[p].add(-bad_q)
    return s4.sum(0), q4.sum(0)


def _bn_scale_shift(col_sum, col_sq, count, gamma, beta, eps=_BN_EPS):
    mean = col_sum / count
    var = jnp.maximum(col_sq / count - mean * mean, 0.0)   # clamp: no NaN rsqrt
    scale = gamma * jax.lax.rsqrt(var + eps)
    shift = beta - mean * scale
    return scale, shift


# ------------------------------ weight packing -------------------------------

def _build_phase_wmat(w, cin_p, cout_p):
    """PyTorch ConvTranspose2d weight (Cin, Cout, 4, 4), stride 2, pad 1 ->
    phase-decomposed matmul weight (4*cin_p, 4*cout_p) in bf16."""
    cin, cout = w.shape[0], w.shape[1]
    wm = jnp.zeros((4, cin_p, 4, cout_p), jnp.float32)
    for dr in (0, 1):
        for dc in (0, 1):
            for r in (0, 1):
                for s in (0, 1):
                    kh = 3 - r - 2 * dr
                    kw = 3 - s - 2 * dc
                    wm = wm.at[2 * dr + dc, :cin, 2 * r + s, :cout].set(
                        w[:, :, kh, kw])
    return wm.reshape(4 * cin_p, 4 * cout_p).astype(jnp.bfloat16)


def _build_first_wmat(w, cout_p):
    """ConvTranspose2d(k=4, s=1, p=0) on a 1x1 input is a plain matmul:
    weight (Cin, Cout, 4, 4) -> (Cin, 16*cout_p), column order (kh, kw, co)."""
    cin, cout = w.shape[0], w.shape[1]
    wm = jnp.zeros((cin, 16, cout_p), jnp.float32)
    wm = wm.at[:, :, :cout].set(
        jnp.transpose(w, (0, 2, 3, 1)).reshape(cin, 16, cout))
    return wm.reshape(cin, 16 * cout_p).astype(jnp.bfloat16)


def _pad_bn(gamma, beta, cp):
    c = gamma.shape[0]
    g = jnp.ones((cp,), jnp.float32).at[:c].set(gamma)
    b = jnp.zeros((cp,), jnp.float32).at[:c].set(beta)
    return g, b


# --------------------------------- model ------------------------------------

class GeneratorPallas:
    def __init__(self, *, nz, nc, ngf, num_classes, key):
        self.nz, self.nc, self.ngf, self.num_classes = nz, nc, ngf, num_classes
        ks = jax.random.split(key, 6)
        std = 0.02  # DCGAN-style init

        self.label_emb = jax.random.normal(
            ks[0], (num_classes, num_classes), jnp.float32)

        # Raw PyTorch-layout ConvTranspose2d weights (Cin, Cout, 4, 4), bias=False.
        w1 = std * jax.random.normal(ks[1], (nz + num_classes, ngf * 8, 4, 4), jnp.float32)
        w2 = std * jax.random.normal(ks[2], (ngf * 8, ngf * 4, 4, 4), jnp.float32)
        w3 = std * jax.random.normal(ks[3], (ngf * 4, ngf * 2, 4, 4), jnp.float32)
        w4 = std * jax.random.normal(ks[4], (ngf * 2, ngf, 4, 4), jnp.float32)
        w5 = std * jax.random.normal(ks[5], (ngf, nc, 4, 4), jnp.float32)

        # Channel padding plan (activations carry padded channels; the padded
        # weight rows/cols are zero, and padded channels stay exactly zero).
        self.c1p = _pad_channels(ngf * 8)
        self.c2p = _pad_channels(ngf * 4)
        self.c3p = _pad_channels(ngf * 2)
        self.c4p = _pad_channels(ngf)
        self.c5p = _pad_channels(nc)

        # Precompute matmul weights once (bf16).
        self.wmat1 = _build_first_wmat(w1, self.c1p)
        self.wmat2 = _build_phase_wmat(w2, self.c1p, self.c2p)
        self.wmat3 = _build_phase_wmat(w3, self.c2p, self.c3p)
        self.wmat4 = _build_phase_wmat(w4, self.c3p, self.c4p)
        self.wmat5 = _build_phase_wmat(w5, self.c4p, self.c5p)

        # BatchNorm affine params (PyTorch init: gamma=1, beta=0), channel-padded.
        self.bn = [
            _pad_bn(jnp.ones((ngf * 8,), jnp.float32), jnp.zeros((ngf * 8,), jnp.float32), self.c1p),
            _pad_bn(jnp.ones((ngf * 4,), jnp.float32), jnp.zeros((ngf * 4,), jnp.float32), self.c2p),
            _pad_bn(jnp.ones((ngf * 2,), jnp.float32), jnp.zeros((ngf * 2,), jnp.float32), self.c3p),
            _pad_bn(jnp.ones((ngf,), jnp.float32), jnp.zeros((ngf,), jnp.float32), self.c4p),
        ]

        self._fwd = jax.jit(self._forward)

    # TODO(synk): save()/load() checkpoint I/O from the reference module is
    # host-side state management and is intentionally not implemented here.
    def _forward(self, z, labels):
        b = z.shape[0]
        # Standard cDCGAN usage: 1x1 latent spatial.
        assert z.shape[2] == 1 and z.shape[3] == 1, "expects z of shape (B, nz, 1, 1)"

        emb = jnp.take(self.label_emb, labels, axis=0)          # (B, num_classes)
        x0 = jnp.concatenate([z.reshape(b, self.nz), emb], axis=1)
        x0 = x0.astype(jnp.bfloat16)                            # (B, nz + n_cls)

        # ---- layer 1: ConvT(k4,s1,p0) on 1x1 -> 4x4, BN + ReLU --------------
        q, cs, cq = matmul_stats_pallas(x0, self.wmat1)         # (Mp, 16*c1p)
        cs = cs.reshape(16, self.c1p).sum(axis=0)
        cq = cq.reshape(16, self.c1p).sum(axis=0)
        scale, shift = _bn_scale_shift(cs, cq, b * 16, *self.bn[0])
        y = affine_relu_pallas(q, jnp.tile(scale, 16), jnp.tile(shift, 16))
        x = y[:b].reshape(b, 4, 4, self.c1p)                    # NHWC, bf16

        # ---- layers 2-4: phase ConvT(k4,s2,p1) + BN + ReLU ------------------
        for wmat, (gamma, beta), cout_p in (
                (self.wmat2, self.bn[1], self.c2p),
                (self.wmat3, self.bn[2], self.c3p),
                (self.wmat4, self.bn[3], self.c4p)):
            _, h, w_, _ = x.shape
            patches = _phase_patches(x)                         # (M, 4*Cin_p) bf16
            q, cs, cq = matmul_stats_pallas(patches, wmat)      # (Mp, 4*cout_p)
            cs, cq = _phase_valid_stats(q, cs, cq, b, h, w_, cout_p)
            scale, shift = _bn_scale_shift(cs, cq, b * 4 * h * w_, gamma, beta)
            y = affine_relu_pallas(q, jnp.tile(scale, 4), jnp.tile(shift, 4))
            x = _phase_interleave(y, b, h, w_, cout_p)          # (B, 2H, 2W, Cp)

        # ---- layer 5: phase ConvT(k4,s2,p1) with fused tanh -----------------
        _, h, w_, _ = x.shape
        patches = _phase_patches(x)
        q = matmul_tanh_pallas(patches, self.wmat5)             # (Mp, 4*c5p) f32
        y = _phase_interleave(q, b, h, w_, self.c5p)            # (B, 2H, 2W, c5p)
        y = y[..., :self.nc]                                    # drop padded chans
        return jnp.transpose(y, (0, 3, 1, 2))                   # NCHW, f32


    def __call__(self, z, labels):
        return self._fwd(z, labels)


if __name__ == "__main__":
    nz, nc, ngf, num_classes, B = 16, 3, 8, 10, 2
    key = jax.random.PRNGKey(0)
    kp, kz = jax.random.split(key)

    gen = GeneratorPallas(nz=nz, nc=nc, ngf=ngf, num_classes=num_classes, key=kp)

    z = jax.random.normal(kz, (B, nz, 1, 1), jnp.float32)
    labels = jnp.array([3, 7], dtype=jnp.int32)

    out = gen(z, labels)
    out = jax.block_until_ready(out)

    assert out.shape == (B, nc, 64, 64), out.shape
    assert bool(jnp.all(jnp.isfinite(out)))
    assert bool(jnp.all(jnp.abs(out) <= 1.0 + 1e-6))  # tanh range
    print("KERNEL_OK")
</pallas_src>

<mosaic_0001>
module attributes {stable_mosaic.version = 11 : i64} {
  func.func @_mm_stats_kernel(%arg0: i32, %arg1: memref<8x26xbf16, #tpu.memory_space<vmem>>, %arg2: memref<26x1024xbf16, #tpu.memory_space<vmem>>, %arg3: memref<8x1024xbf16, #tpu.memory_space<vmem>>, %arg4: memref<1x1x1024xf32, #tpu.memory_space<vmem>>, %arg5: memref<1x1x1024xf32, #tpu.memory_space<vmem>>) attributes {dimension_semantics = [#tpu.dimension_semantics<parallel>], iteration_bounds = array<i64: 1>, scalar_prefetch = 0 : i64, scratch_operands = 0 : i64, tpu.core_type = #tpu.core_type<tc>, window_params = [{transform_indices = @transform_0, window_bounds = array<i64: 8, 26>}, {pipeline_mode = #tpu.pipeline_mode<synchronous>, transform_indices = @transform_1, window_bounds = array<i64: 26, 1024>}, {transform_indices = @transform_2, window_bounds = array<i64: 8, 1024>}, {transform_indices = @transform_3, window_bounds = array<i64: 1, 1, 1024>}, {transform_indices = @transform_4, window_bounds = array<i64: 1, 1, 1024>}]} {
    %c0 = arith.constant 0 : index
    %c0_0 = arith.constant 0 : index
    %0 = vector.load %arg1[%c0, %c0_0] : memref<8x26xbf16, #tpu.memory_space<vmem>>, vector<8x26xbf16>
    %c0_1 = arith.constant 0 : index
    %c0_2 = arith.constant 0 : index
    %1 = vector.load %arg2[%c0_1, %c0_2] : memref<26x1024xbf16, #tpu.memory_space<vmem>>, vector<26x1024xbf16>
    %cst = arith.constant dense<0.000000e+00> : vector<8x1024xf32>
    %2 = tpu.matmul %0, %1, %cst {dimension_numbers = #tpu.dot_dimension_numbers<[1], [0], [0], [1], [0, 0, 1, 1], [], []>} : vector<8x26xbf16>, vector<26x1024xbf16>, vector<8x1024xf32> -> vector<8x1024xf32>
    %3 = arith.truncf %2 : vector<8x1024xf32> to vector<8x1024xbf16>
    %c0_3 = arith.constant 0 : index
    %c0_4 = arith.constant 0 : index
    %4 = vector.load %arg3[%c0_3, %c0_4] : memref<8x1024xbf16, #tpu.memory_space<vmem>>, vector<8x1024xbf16>
    tpu.vector_store %arg3[%c0_3, %c0_4], %3 {strides = array<i32>} : memref<8x1024xbf16, #tpu.memory_space<vmem>>, vector<8x1024xbf16>,
    %cst_5 = arith.constant dense<0.000000e+00> : vector<1024xf32>
    %5 = vector.multi_reduction <add>, %2, %cst_5 [0] : vector<8x1024xf32> to vector<1024xf32>
    %6 = vector.shape_cast %5 : vector<1024xf32> to vector<1x1024xf32>
    %c0_6 = arith.constant 0 : index
    %c0_7 = arith.constant 0 : index
    %c0_8 = arith.constant 0 : index
    %7 = vector.load %arg4[%c0_6, %c0_7, %c0_8] : memref<1x1x1024xf32, #tpu.memory_space<vmem>>, vector<1x1x1024xf32>
    %8 = vector.shape_cast %7 : vector<1x1x1024xf32> to vector<1x1024xf32>
    %9 = vector.shape_cast %6 : vector<1x1024xf32> to vector<1x1x1024xf32>
    tpu.vector_store %arg4[%c0_6, %c0_7, %c0_8], %9 {strides = array<i32>} : memref<1x1x1024xf32, #tpu.memory_space<vmem>>, vector<1x1x1024xf32>,
    %10 = arith.mulf %2, %2 : vector<8x1024xf32>
    %cst_9 = arith.constant dense<0.000000e+00> : vector<1024xf32>
    %11 = vector.multi_reduction <add>, %10, %cst_9 [0] : vector<8x1024xf32> to vector<1024xf32>
    %12 = vector.shape_cast %11 : vector<1024xf32> to vector<1x1024xf32>
    %c0_10 = arith.constant 0 : index
    %c0_11 = arith.constant 0 : index
    %c0_12 = arith.constant 0 : index
    %13 = vector.load %arg5[%c0_10, %c0_11, %c0_12] : memref<1x1x1024xf32, #tpu.memory_space<vmem>>, vector<1x1x1024xf32>
    %14 = vector.shape_cast %13 : vector<1x1x1024xf32> to vector<1x1024xf32>
    %15 = vector.shape_cast %12 : vector<1x1024xf32> to vector<1x1x1024xf32>
    tpu.vector_store %arg5[%c0_10, %c0_11, %c0_12], %15 {strides = array<i32>} : memref<1x1x1024xf32, #tpu.memory_space<vmem>>, vector<1x1x1024xf32>,
    return
  }
  func.func @transform_0(%arg0: i32) -> (i32, i32) {
    %c0_i32 = arith.constant 0 : i32
    %c0_i32_0 = arith.constant 0 : i32
    return %arg0, %c0_i32 : i32, i32
  }
  func.func @transform_1(%arg0: i32) -> (i32, i32) {
    %c0_i32 = arith.constant 0 : i32
    %c0_i32_0 = arith.constant 0 : i32
    %c0_i32_1 = arith.constant 0 : i32
    return %c0_i32, %c0_i32_0 : i32, i32
  }
  func.func @transform_2(%arg0: i32) -> (i32, i32) {
    %c0_i32 = arith.constant 0 : i32
    %c0_i32_0 = arith.constant 0 : i32
    return %arg0, %c0_i32 : i32, i32
  }
  func.func @transform_3(%arg0: i32) -> (i32, i32, i32) {
    %c0_i32 = arith.constant 0 : i32
    %c0_i32_0 = arith.constant 0 : i32
    %c0_i32_1 = arith.constant 0 : i32
    return %arg0, %c0_i32, %c0_i32_0 : i32, i32, i32
  }
  func.func @transform_4(%arg0: i32) -> (i32, i32, i32) {
    %c0_i32 = arith.constant 0 : i32
    %c0_i32_0 = arith.constant 0 : i32
    %c0_i32_1 = arith.constant 0 : i32
    return %arg0, %c0_i32, %c0_i32_0 : i32, i32, i32
  }
}

module attributes {stable_mosaic.version = 11 : i64} {
  func.func @_affine_relu_kernel(%arg0: i32, %arg1: memref<8x1024xbf16, #tpu.memory_space<vmem>>, %arg2: memref<1x1024xf32, #tpu.memory_space<vmem>>, %arg3: memref<1x1024xf32, #tpu.memory_space<vmem>>, %arg4: memref<8x1024xbf16, #tpu.memory_space<vmem>>) attributes {dimension_semantics = [#tpu.dimension_semantics<parallel>], iteration_bounds = array<i64: 1>, scalar_prefetch = 0 : i64, scratch_operands = 0 : i64, tpu.core_type = #tpu.core_type<tc>, window_params = [{transform_indices = @transform_0, window_bounds = array<i64: 8, 1024>}, {pipeline_mode = #tpu.pipeline_mode<synchronous>, transform_indices = @transform_1, window_bounds = array<i64: 1, 1024>}, {pipeline_mode = #tpu.pipeline_mode<synchronous>, transform_indices = @transform_2, window_bounds = array<i64: 1, 1024>}, {transform_indices = @transform_3, window_bounds = array<i64: 8, 1024>}]} {
    %c0 = arith.constant 0 : index
    %c0_0 = arith.constant 0 : index
    %0 = vector.load %arg1[%c0, %c0_0] : memref<8x1024xbf16, #tpu.memory_space<vmem>>, vector<8x1024xbf16>
    %1 = arith.extf %0 : vector<8x1024xbf16> to vector<8x1024xf32>
    %c0_1 = arith.constant 0 : index
    %c0_2 = arith.constant 0 : index
    %2 = vector.load %arg2[%c0_1, %c0_2] : memref<1x1024xf32, #tpu.memory_space<vmem>>, vector<1x1024xf32>
    %3 = vector.broadcast %2 : vector<1x1024xf32> to vector<8x1024xf32>
    %4 = arith.mulf %1, %3 : vector<8x1024xf32>
    %c0_3 = arith.constant 0 : index
    %c0_4 = arith.constant 0 : index
    %5 = vector.load %arg3[%c0_3, %c0_4] : memref<1x1024xf32, #tpu.memory_space<vmem>>, vector<1x1024xf32>
    %6 = vector.broadcast %5 : vector<1x1024xf32> to vector<8x1024xf32>
    %7 = arith.addf %4, %6 : vector<8x1024xf32>
    %cst = arith.constant 0.000000e+00 : f32
    %8 = vector.broadcast %cst : f32 to vector<8x1024xf32>
    %9 = arith.maximumf %7, %8 : vector<8x1024xf32>
    %10 = arith.truncf %9 : vector<8x1024xf32> to vector<8x1024xbf16>
    %c0_5 = arith.constant 0 : index
    %c0_6 = arith.constant 0 : index
    %11 = vector.load %arg4[%c0_5, %c0_6] : memref<8x1024xbf16, #tpu.memory_space<vmem>>, vector<8x1024xbf16>
    tpu.vector_store %arg4[%c0_5, %c0_6], %10 {strides = array<i32>} : memref<8x1024xbf16, #tpu.memory_space<vmem>>, vector<8x1024xbf16>,
    return
  }
  func.func @transform_0(%arg0: i32) -> (i32, i32) {
    %c0_i32 = arith.constant 0 : i32
    %c0_i32_0 = arith.constant 0 : i32
    return %arg0, %c0_i32 : i32, i32
  }
  func.func @transform_1(%arg0: i32) -> (i32, i32) {
    %c0_i32 = arith.constant 0 : i32
    %c0_i32_0 = arith.constant 0 : i32
    %c0_i32_1 = arith.constant 0 : i32
    return %c0_i32, %c0_i32_0 : i32, i32
  }
  func.func @transform_2(%arg0: i32) -> (i32, i32) {
    %c0_i32 = arith.constant 0 : i32
    %c0_i32_0 = arith.constant 0 : i32
    %c0_i32_1 = arith.constant 0 : i32
    return %c0_i32, %c0_i32_0 : i32, i32
  }
  func.func @transform_3(%arg0: i32) -> (i32, i32) {
    %c0_i32 = arith.constant 0 : i32
    %c0_i32_0 = arith.constant 0 : i32
    return %arg0, %c0_i32 : i32, i32
  }
}

module attributes {stable_mosaic.version = 11 : i64} {
  func.func @_mm_stats_kernel(%arg0: i32, %arg1: memref<56x256xbf16, #tpu.memory_space<vmem>>, %arg2: memref<256x128xbf16, #tpu.memory_space<vmem>>, %arg3: memref<56x128xbf16, #tpu.memory_space<vmem>>, %arg4: memref<1x1x128xf32, #tpu.memory_space<vmem>>, %arg5: memref<1x1x128xf32, #tpu.memory_space<vmem>>) attributes {dimension_semantics = [#tpu.dimension_semantics<parallel>], iteration_bounds = array<i64: 1>, scalar_prefetch = 0 : i64, scratch_operands = 0 : i64, tpu.core_type = #tpu.core_type<tc>, window_params = [{transform_indices = @transform_0, window_bounds = array<i64: 56, 256>}, {pipeline_mode = #tpu.pipeline_mode<synchronous>, transform_indices = @transform_1, window_bounds = array<i64: 256, 128>}, {transform_indices = @transform_2, window_bounds = array<i64: 56, 128>}, {transform_indices = @transform_3, window_bounds = array<i64: 1, 1, 128>}, {transform_indices = @transform_4, window_bounds = array<i64: 1, 1, 128>}]} {
    %c0 = arith.constant 0 : index
    %c0_0 = arith.constant 0 : index
    %0 = vector.load %arg1[%c0, %c0_0] : memref<56x256xbf16, #tpu.memory_space<vmem>>, vector<56x256xbf16>
    %c0_1 = arith.constant 0 : index
    %c0_2 = arith.constant 0 : index
    %1 = vector.load %arg2[%c0_1, %c0_2] : memref<256x128xbf16, #tpu.memory_space<vmem>>, vector<256x128xbf16>
    %cst = arith.constant dense<0.000000e+00> : vector<56x128xf32>
    %2 = tpu.matmul %0, %1, %cst {dimension_numbers = #tpu.dot_dimension_numbers<[1], [0], [0], [1], [0, 0, 1, 1], [], []>} : vector<56x256xbf16>, vector<256x128xbf16>, vector<56x128xf32> -> vector<56x128xf32>
    %3 = arith.truncf %2 : vector<56x128xf32> to vector<56x128xbf16>
    %c0_3 = arith.constant 0 : index
    %c0_4 = arith.constant 0 : index
    %4 = vector.load %arg3[%c0_3, %c0_4] : memref<56x128xbf16, #tpu.memory_space<vmem>>, vector<56x128xbf16>
    tpu.vector_store %arg3[%c0_3, %c0_4], %3 {strides = array<i32>} : memref<56x128xbf16, #tpu.memory_space<vmem>>, vector<56x128xbf16>,
    %cst_5 = arith.constant dense<0.000000e+00> : vector<128xf32>
    %5 = vector.multi_reduction <add>, %2, %cst_5 [0] : vector<56x128xf32> to vector<128xf32>
    %6 = vector.shape_cast %5 : vector<128xf32> to vector<1x128xf32>
    %c0_6 = arith.constant 0 : index
    %c0_7 = arith.constant 0 : index
    %c0_8 = arith.constant 0 : index
    %7 = vector.load %arg4[%c0_6, %c0_7, %c0_8] : memref<1x1x128xf32, #tpu.memory_space<vmem>>, vector<1x1x128xf32>
    %8 = vector.shape_cast %7 : vector<1x1x128xf32> to vector<1x128xf32>
    %9 = vector.shape_cast %6 : vector<1x128xf32> to vector<1x1x128xf32>
    tpu.vector_store %arg4[%c0_6, %c0_7, %c0_8], %9 {strides = array<i32>} : memref<1x1x128xf32, #tpu.memory_space<vmem>>, vector<1x1x128xf32>,
    %10 = arith.mulf %2, %2 : vector<56x128xf32>
    %cst_9 = arith.constant dense<0.000000e+00> : vector<128xf32>
    %11 = vector.multi_reduction <add>, %10, %cst_9 [0] : vector<56x128xf32> to vector<128xf32>
    %12 = vector.shape_cast %11 : vector<128xf32> to vector<1x128xf32>
    %c0_10 = arith.constant 0 : index
    %c0_11 = arith.constant 0 : index
    %c0_12 = arith.constant 0 : index
    %13 = vector.load %arg5[%c0_10, %c0_11, %c0_12] : memref<1x1x128xf32, #tpu.memory_space<vmem>>, vector<1x1x128xf32>
    %14 = vector.shape_cast %13 : vector<1x1x128xf32> to vector<1x128xf32>
    %15 = vector.shape_cast %12 : vector<1x128xf32> to vector<1x1x128xf32>
    tpu.vector_store %arg5[%c0_10, %c0_11, %c0_12], %15 {strides = array<i32>} : memref<1x1x128xf32, #tpu.memory_space<vmem>>, vector<1x1x128xf32>,
    return
  }
  func.func @transform_0(%arg0: i32) -> (i32, i32) {
    %c0_i32 = arith.constant 0 : i32
    %c0_i32_0 = arith.constant 0 : i32
    return %arg0, %c0_i32 : i32, i32
  }
  func.func @transform_1(%arg0: i32) -> (i32, i32) {
    %c0_i32 = arith.constant 0 : i32
    %c0_i32_0 = arith.constant 0 : i32
    %c0_i32_1 = arith.constant 0 : i32
    return %c0_i32, %c0_i32_0 : i32, i32
  }
  func.func @transform_2(%arg0: i32) -> (i32, i32) {
    %c0_i32 = arith.constant 0 : i32
    %c0_i32_0 = arith.constant 0 : i32
    return %arg0, %c0_i32 : i32, i32
  }
  func.func @transform_3(%arg0: i32) -> (i32, i32, i32) {
    %c0_i32 = arith.constant 0 : i32
    %c0_i32_0 = arith.constant 0 : i32
    %c0_i32_1 = arith.constant 0 : i32
    return %arg0, %c0_i32, %c0_i32_0 : i32, i32, i32
  }
  func.func @transform_4(%arg0: i32) -> (i32, i32, i32) {
    %c0_i32 = arith.constant 0 : i32
    %c0_i32_0 = arith.constant 0 : i32
    %c0_i32_1 = arith.constant 0 : i32
    return %arg0, %c0_i32, %c0_i32_0 : i32, i32, i32
  }
}

module attributes {stable_mosaic.version = 11 : i64} {
  func.func @_affine_relu_kernel(%arg0: i32, %arg1: memref<56x128xbf16, #tpu.memory_space<vmem>>, %arg2: memref<1x128xf32, #tpu.memory_space<vmem>>, %arg3: memref<1x128xf32, #tpu.memory_space<vmem>>, %arg4: memref<56x128xbf16, #tpu.memory_space<vmem>>) attributes {dimension_semantics = [#tpu.dimension_semantics<parallel>], iteration_bounds = array<i64: 1>, scalar_prefetch = 0 : i64, scratch_operands = 0 : i64, tpu.core_type = #tpu.core_type<tc>, window_params = [{transform_indices = @transform_0, window_bounds = array<i64: 56, 128>}, {pipeline_mode = #tpu.pipeline_mode<synchronous>, transform_indices = @transform_1, window_bounds = array<i64: 1, 128>}, {pipeline_mode = #tpu.pipeline_mode<synchronous>, transform_indices = @transform_2, window_bounds = array<i64: 1, 128>}, {transform_indices = @transform_3, window_bounds = array<i64: 56, 128>}]} {
    %c0 = arith.constant 0 : index
    %c0_0 = arith.constant 0 : index
    %0 = vector.load %arg1[%c0, %c0_0] : memref<56x128xbf16, #tpu.memory_space<vmem>>, vector<56x128xbf16>
    %1 = arith.extf %0 : vector<56x128xbf16> to vector<56x128xf32>
    %c0_1 = arith.constant 0 : index
    %c0_2 = arith.constant 0 : index
    %2 = vector.load %arg2[%c0_1, %c0_2] : memref<1x128xf32, #tpu.memory_space<vmem>>, vector<1x128xf32>
    %3 = vector.broadcast %2 : vector<1x128xf32> to vector<56x128xf32>
    %4 = arith.mulf %1, %3 : vector<56x128xf32>
    %c0_3 = arith.constant 0 : index
    %c0_4 = arith.constant 0 : index
    %5 = vector.load %arg3[%c0_3, %c0_4] : memref<1x128xf32, #tpu.memory_space<vmem>>, vector<1x128xf32>
    %6 = vector.broadcast %5 : vector<1x128xf32> to vector<56x128xf32>
    %7 = arith.addf %4, %6 : vector<56x128xf32>
    %cst = arith.constant 0.000000e+00 : f32
    %8 = vector.broadcast %cst : f32 to vector<56x128xf32>
    %9 = arith.maximumf %7, %8 : vector<56x128xf32>
    %10 = arith.truncf %9 : vector<56x128xf32> to vector<56x128xbf16>
    %c0_5 = arith.constant 0 : index
    %c0_6 = arith.constant 0 : index
    %11 = vector.load %arg4[%c0_5, %c0_6] : memref<56x128xbf16, #tpu.memory_space<vmem>>, vector<56x128xbf16>
    tpu.vector_store %arg4[%c0_5, %c0_6], %10 {strides = array<i32>} : memref<56x128xbf16, #tpu.memory_space<vmem>>, vector<56x128xbf16>,
    return
  }
  func.func @transform_0(%arg0: i32) -> (i32, i32) {
    %c0_i32 = arith.constant 0 : i32
    %c0_i32_0 = arith.constant 0 : i32
    return %arg0, %c0_i32 : i32, i32
  }
  func.func @transform_1(%arg0: i32) -> (i32, i32) {
    %c0_i32 = arith.constant 0 : i32
    %c0_i32_0 = arith.constant 0 : i32
    %c0_i32_1 = arith.constant 0 : i32
    return %c0_i32, %c0_i32_0 : i32, i32
  }
  func.func @transform_2(%arg0: i32) -> (i32, i32) {
    %c0_i32 = arith.constant 0 : i32
    %c0_i32_0 = arith.constant 0 : i32
    %c0_i32_1 = arith.constant 0 : i32
    return %c0_i32, %c0_i32_0 : i32, i32
  }
  func.func @transform_3(%arg0: i32) -> (i32, i32) {
    %c0_i32 = arith.constant 0 : i32
    %c0_i32_0 = arith.constant 0 : i32
    return %arg0, %c0_i32 : i32, i32
  }
}

module attributes {stable_mosaic.version = 11 : i64} {
  func.func @_mm_stats_kernel(%arg0: i32, %arg1: memref<128x128xbf16, #tpu.memory_space<vmem>>, %arg2: memref<128x128xbf16, #tpu.memory_space<vmem>>, %arg3: memref<128x128xbf16, #tpu.memory_space<vmem>>, %arg4: memref<1x1x128xf32, #tpu.memory_space<vmem>>, %arg5: memref<1x1x128xf32, #tpu.memory_space<vmem>>) attributes {dimension_semantics = [#tpu.dimension_semantics<parallel>], iteration_bounds = array<i64: 2>, scalar_prefetch = 0 : i64, scratch_operands = 0 : i64, tpu.core_type = #tpu.core_type<tc>, window_params = [{transform_indices = @transform_0, window_bounds = array<i64: 128, 128>}, {pipeline_mode = #tpu.pipeline_mode<synchronous>, transform_indices = @transform_1, window_bounds = array<i64: 128, 128>}, {transform_indices = @transform_2, window_bounds = array<i64: 128, 128>}, {transform_indices = @transform_3, window_bounds = array<i64: 1, 1, 128>}, {transform_indices = @transform_4, window_bounds = array<i64: 1, 1, 128>}]} {
    %c0 = arith.constant 0 : index
    %c0_0 = arith.constant 0 : index
    %0 = vector.load %arg1[%c0, %c0_0] : memref<128x128xbf16, #tpu.memory_space<vmem>>, vector<128x128xbf16>
    %c0_1 = arith.constant 0 : index
    %c0_2 = arith.constant 0 : index
    %1 = vector.load %arg2[%c0_1, %c0_2] : memref<128x128xbf16, #tpu.memory_space<vmem>>, vector<128x128xbf16>
    %cst = arith.constant dense<0.000000e+00> : vector<128x128xf32>
    %2 = tpu.matmul %0, %1, %cst {dimension_numbers = #tpu.dot_dimension_numbers<[1], [0], [0], [1], [0, 0, 1, 1], [], []>} : vector<128x128xbf16>, vector<128x128xbf16>, vector<128x128xf32> -> vector<128x128xf32>
    %3 = arith.truncf %2 : vector<128x128xf32> to vector<128x128xbf16>
    %c0_3 = arith.constant 0 : index
    %c0_4 = arith.constant 0 : index
    %4 = vector.load %arg3[%c0_3, %c0_4] : memref<128x128xbf16, #tpu.memory_space<vmem>>, vector<128x128xbf16>
    tpu.vector_store %arg3[%c0_3, %c0_4], %3 {strides = array<i32>} : memref<128x128xbf16, #tpu.memory_space<vmem>>, vector<128x128xbf16>,
    %cst_5 = arith.constant dense<0.000000e+00> : vector<128xf32>
    %5 = vector.multi_reduction <add>, %2, %cst_5 [0] : vector<128x128xf32> to vector<128xf32>
    %6 = vector.shape_cast %5 : vector<128xf32> to vector<1x128xf32>
    %c0_6 = arith.constant 0 : index
    %c0_7 = arith.constant 0 : index
    %c0_8 = arith.constant 0 : index
    %7 = vector.load %arg4[%c0_6, %c0_7, %c0_8] : memref<1x1x128xf32, #tpu.memory_space<vmem>>, vector<1x1x128xf32>
    %8 = vector.shape_cast %7 : vector<1x1x128xf32> to vector<1x128xf32>
    %9 = vector.shape_cast %6 : vector<1x128xf32> to vector<1x1x128xf32>
    tpu.vector_store %arg4[%c0_6, %c0_7, %c0_8], %9 {strides = array<i32>} : memref<1x1x128xf32, #tpu.memory_space<vmem>>, vector<1x1x128xf32>,
    %10 = arith.mulf %2, %2 : vector<128x128xf32>
    %cst_9 = arith.constant dense<0.000000e+00> : vector<128xf32>
    %11 = vector.multi_reduction <add>, %10, %cst_9 [0] : vector<128x128xf32> to vector<128xf32>
    %12 = vector.shape_cast %11 : vector<128xf32> to vector<1x128xf32>
    %c0_10 = arith.constant 0 : index
    %c0_11 = arith.constant 0 : index
    %c0_12 = arith.constant 0 : index
    %13 = vector.load %arg5[%c0_10, %c0_11, %c0_12] : memref<1x1x128xf32, #tpu.memory_space<vmem>>, vector<1x1x128xf32>
    %14 = vector.shape_cast %13 : vector<1x1x128xf32> to vector<1x128xf32>
    %15 = vector.shape_cast %12 : vector<1x128xf32> to vector<1x1x128xf32>
    tpu.vector_store %arg5[%c0_10, %c0_11, %c0_12], %15 {strides = array<i32>} : memref<1x1x128xf32, #tpu.memory_space<vmem>>, vector<1x1x128xf32>,
    return
  }
  func.func @transform_0(%arg0: i32) -> (i32, i32) {
    %c0_i32 = arith.constant 0 : i32
    %c0_i32_0 = arith.constant 0 : i32
    return %arg0, %c0_i32 : i32, i32
  }
  func.func @transform_1(%arg0: i32) -> (i32, i32) {
    %c0_i32 = arith.constant 0 : i32
    %c0_i32_0 = arith.constant 0 : i32
    %c0_i32_1 = arith.constant 0 : i32
    return %c0_i32, %c0_i32_0 : i32, i32
  }
  func.func @transform_2(%arg0: i32) -> (i32, i32) {
    %c0_i32 = arith.constant 0 : i32
    %c0_i32_0 = arith.constant 0 : i32
    return %arg0, %c0_i32 : i32, i32
  }
  func.func @transform_3(%arg0: i32) -> (i32, i32, i32) {
    %c0_i32 = arith.constant 0 : i32
    %c0_i32_0 = arith.constant 0 : i32
    %c0_i32_1 = arith.constant 0 : i32
    return %arg0, %c0_i32, %c0_i32_0 : i32, i32, i32
  }
  func.func @transform_4(%arg0: i32) -> (i32, i32, i32) {
    %c0_i32 = arith.constant 0 : i32
    %c0_i32_0 = arith.constant 0 : i32
    %c0_i32_1 = arith.constant 0 : i32
    return %arg0, %c0_i32, %c0_i32_0 : i32, i32, i32
  }
}

module attributes {stable_mosaic.version = 11 : i64} {
  func.func @_affine_relu_kernel(%arg0: i32, %arg1: memref<128x128xbf16, #tpu.memory_space<vmem>>, %arg2: memref<1x128xf32, #tpu.memory_space<vmem>>, %arg3: memref<1x128xf32, #tpu.memory_space<vmem>>, %arg4: memref<128x128xbf16, #tpu.memory_space<vmem>>) attributes {dimension_semantics = [#tpu.dimension_semantics<parallel>], iteration_bounds = array<i64: 2>, scalar_prefetch = 0 : i64, scratch_operands = 0 : i64, tpu.core_type = #tpu.core_type<tc>, window_params = [{transform_indices = @transform_0, window_bounds = array<i64: 128, 128>}, {pipeline_mode = #tpu.pipeline_mode<synchronous>, transform_indices = @transform_1, window_bounds = array<i64: 1, 128>}, {pipeline_mode = #tpu.pipeline_mode<synchronous>, transform_indices = @transform_2, window_bounds = array<i64: 1, 128>}, {transform_indices = @transform_3, window_bounds = array<i64: 128, 128>}]} {
    %c0 = arith.constant 0 : index
    %c0_0 = arith.constant 0 : index
    %0 = vector.load %arg1[%c0, %c0_0] : memref<128x128xbf16, #tpu.memory_space<vmem>>, vector<128x128xbf16>
    %1 = arith.extf %0 : vector<128x128xbf16> to vector<128x128xf32>
    %c0_1 = arith.constant 0 : index
    %c0_2 = arith.constant 0 : index
    %2 = vector.load %arg2[%c0_1, %c0_2] : memref<1x128xf32, #tpu.memory_space<vmem>>, vector<1x128xf32>
    %3 = vector.broadcast %2 : vector<1x128xf32> to vector<128x128xf32>
    %4 = arith.mulf %1, %3 : vector<128x128xf32>
    %c0_3 = arith.constant 0 : index
    %c0_4 = arith.constant 0 : index
    %5 = vector.load %arg3[%c0_3, %c0_4] : memref<1x128xf32, #tpu.memory_space<vmem>>, vector<1x128xf32>
    %6 = vector.broadcast %5 : vector<1x128xf32> to vector<128x128xf32>
    %7 = arith.addf %4, %6 : vector<128x128xf32>
    %cst = arith.constant 0.000000e+00 : f32
    %8 = vector.broadcast %cst : f32 to vector<128x128xf32>
    %9 = arith.maximumf %7, %8 : vector<128x128xf32>
    %10 = arith.truncf %9 : vector<128x128xf32> to vector<128x128xbf16>
    %c0_5 = arith.constant 0 : index
    %c0_6 = arith.constant 0 : index
    %11 = vector.load %arg4[%c0_5, %c0_6] : memref<128x128xbf16, #tpu.memory_space<vmem>>, vector<128x128xbf16>
    tpu.vector_store %arg4[%c0_5, %c0_6], %10 {strides = array<i32>} : memref<128x128xbf16, #tpu.memory_space<vmem>>, vector<128x128xbf16>,
    return
  }
  func.func @transform_0(%arg0: i32) -> (i32, i32) {
    %c0_i32 = arith.constant 0 : i32
    %c0_i32_0 = arith.constant 0 : i32
    return %arg0, %c0_i32 : i32, i32
  }
  func.func @transform_1(%arg0: i32) -> (i32, i32) {
    %c0_i32 = arith.constant 0 : i32
    %c0_i32_0 = arith.constant 0 : i32
    %c0_i32_1 = arith.constant 0 : i32
    return %c0_i32, %c0_i32_0 : i32, i32
  }
  func.func @transform_2(%arg0: i32) -> (i32, i32) {
    %c0_i32 = arith.constant 0 : i32
    %c0_i32_0 = arith.constant 0 : i32
    %c0_i32_1 = arith.constant 0 : i32
    return %c0_i32, %c0_i32_0 : i32, i32
  }
  func.func @transform_3(%arg0: i32) -> (i32, i32) {
    %c0_i32 = arith.constant 0 : i32
    %c0_i32_0 = arith.constant 0 : i32
    return %arg0, %c0_i32 : i32, i32
  }
}

module attributes {stable_mosaic.version = 11 : i64} {
  func.func @_mm_stats_kernel(%arg0: i32, %arg1: memref<128x128xbf16, #tpu.memory_space<vmem>>, %arg2: memref<128x128xbf16, #tpu.memory_space<vmem>>, %arg3: memref<128x128xbf16, #tpu.memory_space<vmem>>, %arg4: memref<1x1x128xf32, #tpu.memory_space<vmem>>, %arg5: memref<1x1x128xf32, #tpu.memory_space<vmem>>) attributes {dimension_semantics = [#tpu.dimension_semantics<parallel>], iteration_bounds = array<i64: 5>, scalar_prefetch = 0 : i64, scratch_operands = 0 : i64, tpu.core_type = #tpu.core_type<tc>, window_params = [{transform_indices = @transform_0, window_bounds = array<i64: 128, 128>}, {pipeline_mode = #tpu.pipeline_mode<synchronous>, transform_indices = @transform_1, window_bounds = array<i64: 128, 128>}, {transform_indices = @transform_2, window_bounds = array<i64: 128, 128>}, {transform_indices = @transform_3, window_bounds = array<i64: 1, 1, 128>}, {transform_indices = @transform_4, window_bounds = array<i64: 1, 1, 128>}]} {
    %c0 = arith.constant 0 : index
    %c0_0 = arith.constant 0 : index
    %0 = vector.load %arg1[%c0, %c0_0] : memref<128x128xbf16, #tpu.memory_space<vmem>>, vector<128x128xbf16>
    %c0_1 = arith.constant 0 : index
    %c0_2 = arith.constant 0 : index
    %1 = vector.load %arg2[%c0_1, %c0_2] : memref<128x128xbf16, #tpu.memory_space<vmem>>, vector<128x128xbf16>
    %cst = arith.constant dense<0.000000e+00> : vector<128x128xf32>
    %2 = tpu.matmul %0, %1, %cst {dimension_numbers = #tpu.dot_dimension_numbers<[1], [0], [0], [1], [0, 0, 1, 1], [], []>} : vector<128x128xbf16>, vector<128x128xbf16>, vector<128x128xf32> -> vector<128x128xf32>
    %3 = arith.truncf %2 : vector<128x128xf32> to vector<128x128xbf16>
    %c0_3 = arith.constant 0 : index
    %c0_4 = arith.constant 0 : index
    %4 = vector.load %arg3[%c0_3, %c0_4] : memref<128x128xbf16, #tpu.memory_space<vmem>>, vector<128x128xbf16>
    tpu.vector_store %arg3[%c0_3, %c0_4], %3 {strides = array<i32>} : memref<128x128xbf16, #tpu.memory_space<vmem>>, vector<128x128xbf16>,
    %cst_5 = arith.constant dense<0.000000e+00> : vector<128xf32>
    %5 = vector.multi_reduction <add>, %2, %cst_5 [0] : vector<128x128xf32> to vector<128xf32>
    %6 = vector.shape_cast %5 : vector<128xf32> to vector<1x128xf32>
    %c0_6 = arith.constant 0 : index
    %c0_7 = arith.constant 0 : index
    %c0_8 = arith.constant 0 : index
    %7 = vector.load %arg4[%c0_6, %c0_7, %c0_8] : memref<1x1x128xf32, #tpu.memory_space<vmem>>, vector<1x1x128xf32>
    %8 = vector.shape_cast %7 : vector<1x1x128xf32> to vector<1x128xf32>
    %9 = vector.shape_cast %6 : vector<1x128xf32> to vector<1x1x128xf32>
    tpu.vector_store %arg4[%c0_6, %c0_7, %c0_8], %9 {strides = array<i32>} : memref<1x1x128xf32, #tpu.memory_space<vmem>>, vector<1x1x128xf32>,
    %10 = arith.mulf %2, %2 : vector<128x128xf32>
    %cst_9 = arith.constant dense<0.000000e+00> : vector<128xf32>
    %11 = vector.multi_reduction <add>, %10, %cst_9 [0] : vector<128x128xf32> to vector<128xf32>
    %12 = vector.shape_cast %11 : vector<128xf32> to vector<1x128xf32>
    %c0_10 = arith.constant 0 : index
    %c0_11 = arith.constant 0 : index
    %c0_12 = arith.constant 0 : index
    %13 = vector.load %arg5[%c0_10, %c0_11, %c0_12] : memref<1x1x128xf32, #tpu.memory_space<vmem>>, vector<1x1x128xf32>
    %14 = vector.shape_cast %13 : vector<1x1x128xf32> to vector<1x128xf32>
    %15 = vector.shape_cast %12 : vector<1x128xf32> to vector<1x1x128xf32>
    tpu.vector_store %arg5[%c0_10, %c0_11, %c0_12], %15 {strides = array<i32>} : memref<1x1x128xf32, #tpu.memory_space<vmem>>, vector<1x1x128xf32>,
    return
  }
  func.func @transform_0(%arg0: i32) -> (i32, i32) {
    %c0_i32 = arith.constant 0 : i32
    %c0_i32_0 = arith.constant 0 : i32
    return %arg0, %c0_i32 : i32, i32
  }
  func.func @transform_1(%arg0: i32) -> (i32, i32) {
    %c0_i32 = arith.constant 0 : i32
    %c0_i32_0 = arith.constant 0 : i32
    %c0_i32_1 = arith.constant 0 : i32
    return %c0_i32, %c0_i32_0 : i32, i32
  }
  func.func @transform_2(%arg0: i32) -> (i32, i32) {
    %c0_i32 = arith.constant 0 : i32
    %c0_i32_0 = arith.constant 0 : i32
    return %arg0, %c0_i32 : i32, i32
  }
  func.func @transform_3(%arg0: i32) -> (i32, i32, i32) {
    %c0_i32 = arith.constant 0 : i32
    %c0_i32_0 = arith.constant 0 : i32
    %c0_i32_1 = arith.constant 0 : i32
    return %arg0, %c0_i32, %c0_i32_0 : i32, i32, i32
  }
  func.func @transform_4(%arg0: i32) -> (i32, i32, i32) {
    %c0_i32 = arith.constant 0 : i32
    %c0_i32_0 = arith.constant 0 : i32
    %c0_i32_1 = arith.constant 0 : i32
    return %arg0, %c0_i32, %c0_i32_0 : i32, i32, i32
  }
}

module attributes {stable_mosaic.version = 11 : i64} {
  func.func @_affine_relu_kernel(%arg0: i32, %arg1: memref<128x128xbf16, #tpu.memory_space<vmem>>, %arg2: memref<1x128xf32, #tpu.memory_space<vmem>>, %arg3: memref<1x128xf32, #tpu.memory_space<vmem>>, %arg4: memref<128x128xbf16, #tpu.memory_space<vmem>>) attributes {dimension_semantics = [#tpu.dimension_semantics<parallel>], iteration_bounds = array<i64: 5>, scalar_prefetch = 0 : i64, scratch_operands = 0 : i64, tpu.core_type = #tpu.core_type<tc>, window_params = [{transform_indices = @transform_0, window_bounds = array<i64: 128, 128>}, {pipeline_mode = #tpu.pipeline_mode<synchronous>, transform_indices = @transform_1, window_bounds = array<i64: 1, 128>}, {pipeline_mode = #tpu.pipeline_mode<synchronous>, transform_indices = @transform_2, window_bounds = array<i64: 1, 128>}, {transform_indices = @transform_3, window_bounds = array<i64: 128, 128>}]} {
    %c0 = arith.constant 0 : index
    %c0_0 = arith.constant 0 : index
    %0 = vector.load %arg1[%c0, %c0_0] : memref<128x128xbf16, #tpu.memory_space<vmem>>, vector<128x128xbf16>
    %1 = arith.extf %0 : vector<128x128xbf16> to vector<128x128xf32>
    %c0_1 = arith.constant 0 : index
    %c0_2 = arith.constant 0 : index
    %2 = vector.load %arg2[%c0_1, %c0_2] : memref<1x128xf32, #tpu.memory_space<vmem>>, vector<1x128xf32>
    %3 = vector.broadcast %2 : vector<1x128xf32> to vector<128x128xf32>
    %4 = arith.mulf %1, %3 : vector<128x128xf32>
    %c0_3 = arith.constant 0 : index
    %c0_4 = arith.constant 0 : index
    %5 = vector.load %arg3[%c0_3, %c0_4] : memref<1x128xf32, #tpu.memory_space<vmem>>, vector<1x128xf32>
    %6 = vector.broadcast %5 : vector<1x128xf32> to vector<128x128xf32>
    %7 = arith.addf %4, %6 : vector<128x128xf32>
    %cst = arith.constant 0.000000e+00 : f32
    %8 = vector.broadcast %cst : f32 to vector<128x128xf32>
    %9 = arith.maximumf %7, %8 : vector<128x128xf32>
    %10 = arith.truncf %9 : vector<128x128xf32> to vector<128x128xbf16>
    %c0_5 = arith.constant 0 : index
    %c0_6 = arith.constant 0 : index
    %11 = vector.load %arg4[%c0_5, %c0_6] : memref<128x128xbf16, #tpu.memory_space<vmem>>, vector<128x128xbf16>
    tpu.vector_store %arg4[%c0_5, %c0_6], %10 {strides = array<i32>} : memref<128x128xbf16, #tpu.memory_space<vmem>>, vector<128x128xbf16>,
    return
  }
  func.func @transform_0(%arg0: i32) -> (i32, i32) {
    %c0_i32 = arith.constant 0 : i32
    %c0_i32_0 = arith.constant 0 : i32
    return %arg0, %c0_i32 : i32, i32
  }
  func.func @transform_1(%arg0: i32) -> (i32, i32) {
    %c0_i32 = arith.constant 0 : i32
    %c0_i32_0 = arith.constant 0 : i32
    %c0_i32_1 = arith.constant 0 : i32
    return %c0_i32, %c0_i32_0 : i32, i32
  }
  func.func @transform_2(%arg0: i32) -> (i32, i32) {
    %c0_i32 = arith.constant 0 : i32
    %c0_i32_0 = arith.constant 0 : i32
    %c0_i32_1 = arith.constant 0 : i32
    return %c0_i32, %c0_i32_0 : i32, i32
  }
  func.func @transform_3(%arg0: i32) -> (i32, i32) {
    %c0_i32 = arith.constant 0 : i32
    %c0_i32_0 = arith.constant 0 : i32
    return %arg0, %c0_i32 : i32, i32
  }
}

module attributes {stable_mosaic.version = 11 : i64} {
  func.func @_mm_tanh_kernel(%arg0: i32, %arg1: memref<256x128xbf16, #tpu.memory_space<vmem>>, %arg2: memref<128x128xbf16, #tpu.memory_space<vmem>>, %arg3: memref<256x128xf32, #tpu.memory_space<vmem>>) attributes {dimension_semantics = [#tpu.dimension_semantics<parallel>], iteration_bounds = array<i64: 9>, scalar_prefetch = 0 : i64, scratch_operands = 0 : i64, tpu.core_type = #tpu.core_type<tc>, window_params = [{transform_indices = @transform_0, window_bounds = array<i64: 256, 128>}, {pipeline_mode = #tpu.pipeline_mode<synchronous>, transform_indices = @transform_1, window_bounds = array<i64: 128, 128>}, {transform_indices = @transform_2, window_bounds = array<i64: 256, 128>}]} {
    %c0 = arith.constant 0 : index
    %c0_0 = arith.constant 0 : index
    %0 = vector.load %arg1[%c0, %c0_0] : memref<256x128xbf16, #tpu.memory_space<vmem>>, vector<256x128xbf16>
    %c0_1 = arith.constant 0 : index
    %c0_2 = arith.constant 0 : index
    %1 = vector.load %arg2[%c0_1, %c0_2] : memref<128x128xbf16, #tpu.memory_space<vmem>>, vector<128x128xbf16>
    %cst = arith.constant dense<0.000000e+00> : vector<256x128xf32>
    %2 = tpu.matmul %0, %1, %cst {dimension_numbers = #tpu.dot_dimension_numbers<[1], [0], [0], [1], [0, 0, 1, 1], [], []>} : vector<256x128xbf16>, vector<128x128xbf16>, vector<256x128xf32> -> vector<256x128xf32>
    %3 = math.tanh %2 : vector<256x128xf32>
    %c0_3 = arith.constant 0 : index
    %c0_4 = arith.constant 0 : index
    %4 = vector.load %arg3[%c0_3, %c0_4] : memref<256x128xf32, #tpu.memory_space<vmem>>, vector<256x128xf32>
    tpu.vector_store %arg3[%c0_3, %c0_4], %3 {strides = array<i32>} : memref<256x128xf32, #tpu.memory_space<vmem>>, vector<256x128xf32>,
    return
  }
  func.func @transform_0(%arg0: i32) -> (i32, i32) {
    %c0_i32 = arith.constant 0 : i32
    %c0_i32_0 = arith.constant 0 : i32
    return %arg0, %c0_i32 : i32, i32
  }
  func.func @transform_1(%arg0: i32) -> (i32, i32) {
    %c0_i32 = arith.constant 0 : i32
    %c0_i32_0 = arith.constant 0 : i32
    %c0_i32_1 = arith.constant 0 : i32
    return %c0_i32, %c0_i32_0 : i32, i32
  }
  func.func @transform_2(%arg0: i32) -> (i32, i32) {
    %c0_i32 = arith.constant 0 : i32
    %c0_i32_0 = arith.constant 0 : i32
    return %arg0, %c0_i32 : i32, i32
  }
}

</mosaic_0001>

<bundles_post_ra>
// kernel: tile.47
= control target key start
LH: loop header
LB: loop body
LE: loop exit
PB: predicated region body
PF: predicated region fallthrough
CT: control target
= control target key end

     0   :  { %s28_s0 = inlined_call_operand.vmem [shape: f32[64], index: 0, kind: input, shape index: {}]   ;;  %s29_s1 = inlined_call_operand.vmem [shape: f32[16,64], index: 1, kind: output, shape index: {}]  }
   0x1   :  { %v4_v0 = vld [vmem:[%s28_s0] ss:$0 sm:$0xff] }
   0x2   :  { %5 = vst [vmem:[%s29_s1] sm:$0xff] %v4_v0  ;;  %8 = vst [vmem:[%s29_s1 + $0x8] sm:$0xff] %v4_v0 }

// kernel: tile.49
= control target key start
LH: loop header
LB: loop body
LE: loop exit
PB: predicated region body
PF: predicated region fallthrough
CT: control target
= control target key end

     0   :  { %vm3_vm0 = vcmask 523264   ;;  %vm10_vm1 = vcmask 1048064   ;;  %s116_s0 = inlined_call_operand.vmem [shape: f32[16,64], index: 0, kind: input, shape index: {}]   ;;  %s117_s1 = inlined_call_operand.vmem [shape: f32[1,1024], index: 1, kind: output, shape index: {}]  }
   0x1   :  { %v66_v0 = vld [vmem:[%s116_s0 + $0x1] ss:$2 sm:$0xff]   ;;  %v2_v1 = vld [vmem:[%s116_s0] ss:$2 sm:$0xff]   ;;  %s75_s0 = smov 64  }
   0x2   :  { %8 = vrot.lane.b32.xlu0 %v66_v0, %s75_s0  ;;  %4 = vst.msk [vmem:[#allocation0] ss:$8 sm:$0xf] %vm3_vm0, %v2_v1   ;;  %5 = vst.msk [vmem:[#allocation0] ss:$8 sm:$0xf0] %vm3_vm0, %v2_v1  }
  0x74   :  { %v9_v2 = vpop.permute.xlu0 %8  }
  0x75   :  { %11 = vst.msk [vmem:[#allocation0] ss:$8 sm:$0xf] %vm10_vm1, %v9_v2   ;;  %12 = vst.msk [vmem:[#allocation0] ss:$8 sm:$0xf0] %vm10_vm1, %v9_v2  }
  0x7c   :  { %v16_v3 = vld [vmem:[#allocation0] sm:$0x1]  ;;  %v20_v4 = vld [vmem:[#allocation0 + $0x8] sm:$0x1]  ;;  %v25_v5 = vld [vmem:[#allocation0 + $0x10] sm:$0x1] }
  0x7d   :  { %18 = vst [vmem:[%s117_s1] sm:$0x1] %v16_v3  ;;  %67 = vst [vmem:[%s117_s1 + $0x1] sm:$0x1] %v20_v4  ;;  %v31_v6 = vld [vmem:[#allocation0 + $0x18] sm:$0x1] }
  0x7e   :  { %68 = vst [vmem:[%s117_s1 + $0x2] sm:$0x1] %v25_v5  ;;  %v37_v7 = vld [vmem:[#allocation0 + $0x20] sm:$0x1]  ;;  %v43_v8 = vld [vmem:[#allocation0 + $0x28] sm:$0x1] }
  0x7f   :  { %69 = vst [vmem:[%s117_s1 + $0x3] sm:$0x1] %v31_v6  ;;  %70 = vst [vmem:[%s117_s1 + $0x4] sm:$0x1] %v37_v7  ;;  %v49_v9 = vld [vmem:[#allocation0 + $0x30] sm:$0x1] }
  0x80   :  { %71 = vst [vmem:[%s117_s1 + $0x5] sm:$0x1] %v43_v8  ;;  %v55_v10 = vld [vmem:[#allocation0 + $0x38] sm:$0x1]  ;;  %72 = vst [vmem:[%s117_s1 + $0x6] sm:$0x1] %v49_v9 }
  0x81   :  { %73 = vst [vmem:[%s117_s1 + $0x7] sm:$0x1] %v55_v10 }

// kernel: _forward.9
= control target key start
LH: loop header
LB: loop body
LE: loop exit
PB: predicated region body
PF: predicated region fallthrough
CT: control target
= control target key end

     0   :  { %10 = vsyncpa [#allocation3], 0  ;;  %s643_s15 = smov [#allocation2]   ;;  %s755_s0 = inlined_call_operand.vmem [shape: bf16[8,26], index: 0, kind: input, shape index: {}]   ;;  %s756_s1 = inlined_call_operand.hbm [shape: bf16[26,1024], index: 1, kind: input, shape index: {}]   ;;  %s757_s2 = inlined_call_operand.vmem [shape: bf16[8,1024], index: 2, kind: output, shape index: {0}]   ;;  %s758_s3 = inlined_call_operand.vmem [shape: f32[1,1,1024], index: 3, kind: output, shape index: {1}]   ;;  %s759_s4 = inlined_call_operand.vmem [shape: f32[1,1,1024], index: 4, kind: output, shape index: {2}]  }
   0x1   :  { %s18_s16 = sshll.u32 %s643_s15, 4  ;;  %s619_s19 = scalar_lea.hbm %s756_s1, 2048  ;;  %s19_s16 = int_to_ptr.vmem [resolvable:$true] %s18_s16 }
   0x2   :  { %p620_p0 = scmp.ne.s32.totalorder %s756_s1, %s619_s19  ;;  %p623_p1 = scmp.lt.u32.totalorder %s619_s19, %s756_s1 }
   0x4   :  { %p625_p2 = pnand %p623_p1, %p620_p0 }
   0x6   :  { %628 = shalt.err (!%p625_p2)
}
   0x7   :  { %s629_s24 = scalar_lea.vmem %s19_s16, 2048  ;;  %p634_p4 = scmp.lt.s32.totalorder %s19_s16, %s19_s16 }
   0x8   :  { %p630_p3 = scmp.ne.s32.totalorder %s19_s16, %s629_s24  ;;  %p635_p5 = scmp.lt.s32.totalorder %s629_s24, %s629_s24 }
   0xa   :  { %p636_p6 = por %p635_p5, %p634_p4 }
   0xc   :  { %p637_p7 = pnand %p636_p6, %p630_p3 }
   0xe   :  { %640 = shalt.err (!%p637_p7)
}
   0xf   :  { %s644_s25 = smov 512   ;;  %s645_s26 = smov 32  }
  0x10   :  { %24 = dma.hbm_to_vmem [thread:$0]  %s756_s1, 2048, %s19_s16, [#allocation3], %s644_s25, %s644_s25, %s645_s26  }
  0x11   :  { %641 = dma.done.wait [#allocation3], 2048  }
  0x12   :  { %642 = vsyncadd [#allocation3], 4294965248  ;;  %v646_v0 = vmov 0   ;;  %v30_v1 = vld [vmem:[#allocation2] sm:$0xff]  ;;  %v31_v3 = vld [vmem:[#allocation2 + $0x8] sm:$0xff]  ;;  %vm122_vm0 = vcmask 1044480   ;;  %v410_v40 = vlaneseq }
  0x13   :  { %179 = vmatprep.mubr.bf16.mxu0 %v646_v0  ;;  %220 = vmatprep.mubr.bf16.mxu1 %v646_v0  ;;  %v34_v2 = vld [vmem:[#allocation2 + $0x20] sm:$0xff]  ;;  %v35_v5 = vld [vmem:[#allocation2 + $0x28] sm:$0xff]  ;;  %v32_v17 = vld [vmem:[#allocation2 + $0x10] sm:$0xff]  ;;  %vm118_vm1 = vcmask 211968   ;;  %v647_v38 = vmov 1966171168  }
  0x14   :  { %v583_v4 = vcombine.high %v30_v1, %v34_v2  ;;  %v582_v6 = vcombine.low %v30_v1, %v34_v2  ;;  %v38_v7 = vld [vmem:[#allocation2 + $0x40] sm:$0xff]  ;;  %v585_v9 = vcombine.high %v31_v3, %v35_v5  ;;  %v584_v10 = vcombine.low %v31_v3, %v35_v5  ;;  %v39_v12 = vld [vmem:[#allocation2 + $0x48] sm:$0xff]  ;;  %v36_v18 = vld [vmem:[#allocation2 + $0x30] sm:$0xff] }
  0x15   :  { %v42_v8 = vld [vmem:[#allocation2 + $0x60] sm:$0x11]  ;;  %v43_v13 = vld [vmem:[#allocation2 + $0x68] sm:$0x11]  ;;  %v33_v19 = vld [vmem:[#allocation2 + $0x18] sm:$0xff]  ;;  %v587_v22 = vcombine.high %v32_v17, %v36_v18  ;;  %v586_v30 = vcombine.low %v32_v17, %v36_v18  ;;  %v408_v39 = vunpack.c.l.s4 %v647_v38  ;;  %v411_v42 = vshrl.u32 %v410_v40, 7 }
  0x16   :  { %v591_v11 = vcombine.high %v38_v7, %v42_v8  ;;  %v590_v14 = vcombine.low %v38_v7, %v42_v8  ;;  %147 = vmatprep.subr.bf16.mxu0 %v583_v4  ;;  %v593_v15 = vcombine.high %v39_v12, %v43_v13  ;;  %v592_v16 = vcombine.low %v39_v12, %v43_v13  ;;  %v37_v20 = vld [vmem:[#allocation2 + $0x38] sm:$0xff]  ;;  %v40_v25 = vld [vmem:[#allocation2 + $0x50] sm:$0xff]  ;;  %v29_v29 = vld [vmem:[%s755_s0] sm:$0xf] }
  0x17   :  { %188 = vmatprep.subr.bf16.mxu1 %v585_v9  ;;  %148 = vmatpush1.bf16.msra.mxu0 %v582_v6  ;;  %v589_v24 = vcombine.high %v33_v19, %v37_v20  ;;  %v44_v26 = vld [vmem:[#allocation2 + $0x70] sm:$0x11]  ;;  %v41_v27 = vld [vmem:[#allocation2 + $0x58] sm:$0xff]  ;;  %v588_v31 = vcombine.low %v33_v19, %v37_v20  ;;  %v409_v41 = vunpack.c.0.s8 %v408_v39 }
  0x18   :  { %189 = vmatpush1.bf16.msra.mxu1 %v584_v10  ;;  %598 = vmatprep.subr.msk.bf16.mxu0 %vm122_vm0, %v591_v11  ;;  %v124_v21 = vsel %vm122_vm0, %v590_v14, 0  ;;  %v130_v23 = vsel %vm122_vm0, %v592_v16, 0  ;;  %v45_v28 = vld [vmem:[#allocation2 + $0x78] sm:$0x11]  ;;  %v595_v32 = vcombine.high %v40_v25, %v44_v26  ;;  %v594_v33 = vcombine.low %v40_v25, %v44_v26 }
  0x19   :  { %600 = vmatprep.subr.msk.bf16.mxu1 %vm122_vm0, %v593_v15  ;;  %v597_v34 = vcombine.high %v41_v27, %v45_v28  ;;  %v596_v35 = vcombine.low %v41_v27, %v45_v28  ;;  %v700_v48 = vsub.s32 %v409_v41, %v411_v42 }
  0x1a   :  { %v136_v36 = vsel %vm122_vm0, %v594_v33, 0 }
  0x1b   :  { %150 = vmatpush1.bf16.msra.mxu0 %v124_v21  ;;  %v142_v37 = vsel %vm122_vm0, %v596_v35, 0 }
  0x1c   :  { %191 = vmatpush1.bf16.msra.mxu1 %v130_v23  ;;  %229 = vmatprep.subr.bf16.mxu0 %v587_v22 }
  0x1d   :  { %270 = vmatprep.subr.bf16.mxu1 %v589_v24 }
  0x1e   :  { %599 = vmatmul.mubr.msk.bf16.vlgmr.msra.gmra.mrb[0].mxu0 %vm118_vm1, %v29_v29 }
  0x1f   :  { %601 = vmatmul.mubr.msk.bf16.vlgmr.msra.gmra.mrb[0].mxu1 %vm118_vm1, %v29_v29  ;;  %230 = vmatpush1.bf16.msra.mxu0 %v586_v30 }
  0x20   :  { %271 = vmatpush1.bf16.msra.mxu1 %v588_v31  ;;  %602 = vmatprep.subr.msk.bf16.mxu0 %vm122_vm0, %v595_v32 }
  0x21   :  { %604 = vmatprep.subr.msk.bf16.mxu1 %vm122_vm0, %v597_v34  ;;  %261 = vmatprep.mubr.bf16.mxu0 %v646_v0 }
  0x22   :  { %302 = vmatprep.mubr.bf16.mxu1 %v646_v0 }
  0x23   :  { %232 = vmatpush1.bf16.msra.mxu0 %v136_v36 }
  0x24   :  { %273 = vmatpush1.bf16.msra.mxu1 %v142_v37 }
  0x26   :  { %603 = vmatmul.mubr.msk.bf16.vlgmr.msra.gmra.mrb[4].mxu0 %vm118_vm1, %v29_v29 }
  0x27   :  { %605 = vmatmul.mubr.msk.bf16.vlgmr.msra.gmra.mrb[4].mxu1 %vm118_vm1, %v29_v29 }
  0xf1   :  { %v181_v43 = vpop.f32.mrb[0].mxu0 }
  0xf2   :  { %v347_v44 = vrot.slane %v181_v43, 4  ;;  %v454_v45 = vmul.f32 %v181_v43, %v181_v43  ;;  %v222_v46 = vpop.f32.mrb[0].mxu1  ;;  %v183_v47 = vpop.f32.mrb[1].mxu0 }
  0xf3   :  { %v359_v49 = vrot.slane %v222_v46, 4  ;;  %v456_v50 = vmul.f32 %v222_v46, %v222_v46  ;;  %v610_v51 = vpack.c.bf16 %v183_v47, %v181_v43  ;;  %v353_v52 = vrot.slane %v183_v47, 4  ;;  %v224_v53 = vpop.f32.mrb[1].mxu1  ;;  %v185_v54 = vpop.f32.mrb[2].mxu0 }
  0xf4   :  { %v348_v55 = vadd.f32 %v347_v44, %v181_v43  ;;  %v462_v56 = vrot.slane %v454_v45, 4  ;;  %v455_v57 = vmul.f32 %v183_v47, %v183_v47  ;;  %v611_v58 = vpack.c.bf16 %v224_v53, %v222_v46  ;;  %v226_v59 = vpop.f32.mrb[2].mxu1  ;;  %v186_v60 = vpop.f32.mrb[3].mxu0 }
  0xf5   :  { %v360_v61 = vadd.f32 %v359_v49, %v222_v46  ;;  %v474_v62 = vrot.slane %v456_v50, 4  ;;  %343 = vst [vmem:[%s757_s2] sm:$0xff] %v610_v51  ;;  %v354_v63 = vadd.f32 %v353_v52, %v183_v47  ;;  %v365_v0 = vrot.slane %v224_v53, 4  ;;  %v227_v1 = vpop.f32.mrb[3].mxu1 }
  0xf6   :  { %v349_v2 = vrot.slane %v348_v55, 2  ;;  %v463_v3 = vadd.f32 %v462_v56, %v454_v45  ;;  %v468_v4 = vrot.slane %v455_v57, 4  ;;  %344 = vst [vmem:[%s757_s2 + $0x8] sm:$0xff] %v611_v58  ;;  %v457_v5 = vmul.f32 %v224_v53, %v224_v53 }
  0xf7   :  { %v361_v6 = vrot.slane %v360_v61, 2  ;;  %v475_v7 = vadd.f32 %v474_v62, %v456_v50  ;;  %v355_v8 = vrot.slane %v354_v63, 2  ;;  %v366_v9 = vadd.f32 %v365_v0, %v224_v53 }
  0xf8   :  { %v350_v10 = vadd.f32 %v349_v2, %v348_v55  ;;  %v464_v11 = vrot.slane %v463_v3, 2  ;;  %v469_v12 = vadd.f32 %v468_v4, %v455_v57  ;;  %v480_v13 = vrot.slane %v457_v5, 4 }
  0xf9   :  { %v362_v14 = vadd.f32 %v361_v6, %v360_v61  ;;  %v476_v15 = vrot.slane %v475_v7, 2  ;;  %v356_v16 = vadd.f32 %v355_v8, %v354_v63  ;;  %v367_v17 = vrot.slane %v366_v9, 2  ;;  %v263_v18 = vpop.f32.mrb[4].mxu0 }
  0xfa   :  { %v351_v19 = vrot.slane %v350_v10, 1  ;;  %v465_v20 = vadd.f32 %v464_v11, %v463_v3  ;;  %v470_v21 = vrot.slane %v469_v12, 2  ;;  %v481_v22 = vadd.f32 %v480_v13, %v457_v5  ;;  %v708_v23 = vpop.f32.mrb[4].mxu1  ;;  %v265_v24 = vpop.f32.mrb[5].mxu0 }
  0xfb   :  { %v363_v25 = vrot.slane %v362_v14, 1  ;;  %v477_v26 = vadd.f32 %v476_v15, %v475_v7  ;;  %v357_v27 = vrot.slane %v356_v16, 1  ;;  %v368_v28 = vadd.f32 %v367_v17, %v366_v9  ;;  %v710_v29 = vpop.f32.mrb[5].mxu1  ;;  %v267_v30 = vpop.f32.mrb[6].mxu0 }
  0xfc   :  { %v352_v31 = vadd.f32 %v351_v19, %v350_v10  ;;  %v466_v32 = vrot.slane %v465_v20, 1  ;;  %v471_v33 = vadd.f32 %v470_v21, %v469_v12  ;;  %v482_v34 = vrot.slane %v481_v22, 2  ;;  %v308_v35 = vpop.f32.mrb[6].mxu1  ;;  %v268_v36 = vpop.f32.mrb[7].mxu0 }
  0xfd   :  { %v364_v37 = vadd.f32 %v363_v25, %v362_v14  ;;  %v478_v38 = vrot.slane %v477_v26, 1  ;;  %v358_v39 = vadd.f32 %v357_v27, %v356_v16  ;;  %v369_v40 = vrot.slane %v368_v28, 1  ;;  %v309_v41 = vpop.f32.mrb[7].mxu1 }
  0xfe   :  { %v467_v42 = vadd.f32 %v466_v32, %v465_v20  ;;  %v472_v43 = vrot.slane %v471_v33, 1  ;;  %v483_v44 = vadd.f32 %v482_v34, %v481_v22  ;;  %v371_v45 = vrot.slane %v263_v18, 4 }
  0xff   :  { %v479_v46 = vadd.f32 %v478_v38, %v477_v26  ;;  %v403_v47 = vcombine.low %v352_v31, %v358_v39  ;;  %v370_v49 = vadd.f32 %v369_v40, %v368_v28  ;;  %v458_v50 = vmul.f32 %v263_v18, %v263_v18 }
 0x100   :  { %v473_v51 = vadd.f32 %v472_v43, %v471_v33  ;;  %v484_v52 = vrot.slane %v483_v44, 1  ;;  %v372_v53 = vadd.f32 %v371_v45, %v263_v18  ;;  %v383_v54 = vrot.slane %v708_v23, 4 }
 0x101   :  { %v714_v55 = vrot.slane %v403_v47, %v700_v48  ;;  %v404_v56 = vcombine.low %v364_v37, %v370_v49  ;;  %v486_v57 = vrot.slane %v458_v50, 4  ;;  %v460_v58 = vmul.f32 %v708_v23, %v708_v23 }
 0x102   :  { %v518_v59 = vcombine.low %v467_v42, %v473_v51  ;;  %v485_v60 = vadd.f32 %v484_v52, %v483_v44  ;;  %v373_v61 = vrot.slane %v372_v53, 2  ;;  %v384_v62 = vadd.f32 %v383_v54, %v708_v23 }
 0x103   :  { %v720_v63 = vrot.slane %v404_v56, %v700_v48  ;;  %v487_v0 = vadd.f32 %v486_v57, %v458_v50  ;;  %v498_v1 = vrot.slane %v460_v58, 4  ;;  %v612_v2 = vpack.c.bf16 %v265_v24, %v263_v18 }
 0x104   :  { %v723_v3 = vrot.slane %v518_v59, %v700_v48  ;;  %v519_v4 = vcombine.low %v479_v46, %v485_v60  ;;  %v374_v5 = vadd.f32 %v373_v61, %v372_v53  ;;  %v377_v9 = vrot.slane %v265_v24, 4 }
 0x105   :  { %v435_v6 = vcombine.low %v714_v55, %v720_v63  ;;  %v488_v7 = vrot.slane %v487_v0, 2  ;;  %v499_v8 = vadd.f32 %v498_v1, %v460_v58  ;;  %345 = vst [vmem:[%s757_s2 + $0x10] sm:$0xff] %v612_v2  ;;  %v385_v11 = vrot.slane %v384_v62, 2 }
 0x106   :  { %v535_v10 = vrot.slane %v519_v4, %v700_v48  ;;  %v459_v12 = vmul.f32 %v265_v24, %v265_v24  ;;  %v378_v13 = vadd.f32 %v377_v9, %v265_v24  ;;  %v375_v17 = vrot.slane %v374_v5, 1 }
 0x107   :  { %v489_v15 = vadd.f32 %v488_v7, %v487_v0  ;;  %v500_v18 = vrot.slane %v499_v8, 2  ;;  %v613_v20 = vpack.c.bf16 %v710_v29, %v708_v23  ;;  %v386_v21 = vadd.f32 %v385_v11, %v384_v62 }
 0x108   :  { %v550_v14 = vcombine.low %v723_v3, %v535_v10  ;;  %v492_v16 = vrot.slane %v459_v12, 4  ;;  %v379_v19 = vrot.slane %v378_v13, 2  ;;  %v389_v25 = vrot.slane %v710_v29, 4 }
 0x109   :  { %346 = vst [vmem:[%s757_s2 + $0x18] sm:$0xff] %v613_v20  ;;  %v461_v24 = vmul.f32 %v710_v29, %v710_v29  ;;  %v490_v27 = vrot.slane %v489_v15, 1  ;;  %v376_v31 = vadd.f32 %v375_v17, %v374_v5  ;;  %v501_v32 = vadd.f32 %v500_v18, %v499_v8 }
 0x10a   :  { %v493_v22 = vadd.f32 %v492_v16, %v459_v12  ;;  %v380_v26 = vadd.f32 %v379_v19, %v378_v13  ;;  %v390_v30 = vadd.f32 %v389_v25, %v710_v29  ;;  %v387_v34 = vrot.slane %v386_v21, 1 }
 0x10b   :  { %v504_v23 = vrot.slane %v461_v24, 4  ;;  %v491_v39 = vadd.f32 %v490_v27, %v489_v15  ;;  %v502_v42 = vrot.slane %v501_v32, 1  ;;  %v443_v61 = vrot.slane %v435_v6, %v700_v48 }
 0x10c   :  { %v494_v28 = vrot.slane %v493_v22, 2  ;;  %v381_v33 = vrot.slane %v380_v26, 1  ;;  %v391_v36 = vrot.slane %v390_v30, 2  ;;  %v388_v45 = vadd.f32 %v387_v34, %v386_v21 }
 0x10d   :  { %v505_v38 = vadd.f32 %v504_v23, %v461_v24  ;;  %v503_v51 = vadd.f32 %v502_v42, %v501_v32  ;;  %v558_v1 = vrot.slane %v550_v14, %v700_v48 }
 0x10e   :  { %v495_v35 = vadd.f32 %v494_v28, %v493_v22  ;;  %v382_v37 = vadd.f32 %v381_v33, %v380_v26  ;;  %v392_v41 = vadd.f32 %v391_v36, %v390_v30 }
 0x10f   :  { %v506_v44 = vrot.slane %v505_v38, 2 }
 0x110   :  { %v496_v40 = vrot.slane %v495_v35, 1  ;;  %v405_v43 = vcombine.low %v376_v31, %v382_v37  ;;  %v393_v47 = vrot.slane %v392_v41, 1 }
 0x111   :  { %v507_v49 = vadd.f32 %v506_v44, %v505_v38 }
 0x112   :  { %v497_v46 = vadd.f32 %v496_v40, %v495_v35  ;;  %v394_v50 = vadd.f32 %v393_v47, %v392_v41  ;;  %v427_v53 = vrot.slane %v405_v43, %v700_v48 }
 0x113   :  { %v508_v52 = vrot.slane %v507_v49, 1 }
 0x114   :  { %v520_v29 = vcombine.low %v491_v39, %v497_v46  ;;  %v406_v54 = vcombine.low %v388_v45, %v394_v50 }
 0x115   :  { %v509_v55 = vadd.f32 %v508_v52, %v507_v49 }
 0x116   :  { %v434_v56 = vrot.slane %v406_v54, %v700_v48  ;;  %v542_v57 = vrot.slane %v520_v29, %v700_v48 }
 0x117   :  { %v521_v58 = vcombine.low %v503_v51, %v509_v55 }
 0x118   :  { %v436_v59 = vcombine.low %v427_v53, %v434_v56 }
 0x119   :  { %v549_v60 = vrot.slane %v521_v58, %v700_v48 }
 0x11a   :  { %v450_v62 = vrot.slane %v436_v59, %v700_v48 }
 0x11b   :  { %v551_v63 = vcombine.low %v542_v57, %v549_v60 }
 0x11c   :  { %v451_v0 = vcombine.low %v443_v61, %v450_v62 }
 0x11d   :  { %v565_v2 = vrot.slane %v551_v63, %v700_v48 }
 0x11e   :  { %453 = vst [vmem:[%s758_s3] sm:$0xff] %v451_v0 }
 0x11f   :  { %v566_v3 = vcombine.low %v558_v1, %v565_v2 }
 0x121   :  { %568 = vst [vmem:[%s759_s4] sm:$0xff] %v566_v3 }
 0x122   :  { %581 = vsyncpa [#allocation3], 1 }

// kernel: _forward.10
= control target key start
LH: loop header
LB: loop body
LE: loop exit
PB: predicated region body
PF: predicated region fallthrough
CT: control target
= control target key end

     0   :  { %v28_v0 = vlaneseq  ;;  %s232_s0 = inlined_call_operand.vmem [shape: bf16[8,1024], index: 0, kind: input, shape index: {}]   ;;  %s233_s1 = inlined_call_operand.vmem [shape: f32[1,1024], index: 1, kind: input, shape index: {}]   ;;  %s234_s2 = inlined_call_operand.vmem [shape: f32[1,1024], index: 2, kind: input, shape index: {}]   ;;  %s235_s3 = inlined_call_operand.vmem [shape: bf16[8,1024], index: 3, kind: output, shape index: {}]  }
   0x1   :  { %v14_v1 = vld [vmem:[%s232_s0] sm:$0xff]  ;;  %v15_v5 = vld [vmem:[%s232_s0 + $0x8] sm:$0xff]  ;;  %v16_v6 = vld [vmem:[%s232_s0 + $0x10] sm:$0xff] }
   0x2   :  { %v18_v2 = vunpack.c.l.bf16 %v14_v1  ;;  %v19_v3 = vunpack.c.h.bf16 %v14_v1  ;;  %v29_v4 = vshrl.u32 %v28_v0, 7  ;;  %v17_v7 = vld [vmem:[%s232_s0 + $0x18] sm:$0xff]  ;;  %v26_v8 = vld [vmem:[%s233_s1] sm:$0xff]  ;;  %v20_v10 = vunpack.c.l.bf16 %v15_v5 }
   0x3   :  { %v76_v9 = vld [vmem:[%s234_s2] sm:$0xff]  ;;  %v21_v11 = vunpack.c.h.bf16 %v15_v5  ;;  %v22_v12 = vunpack.c.l.bf16 %v16_v6  ;;  %v23_v13 = vunpack.c.h.bf16 %v16_v6  ;;  %v24_v20 = vunpack.c.l.bf16 %v17_v7 }
   0x4   :  { %v30_v14 = vsub.s32 0, %v29_v4  ;;  %v34_v15 = vsub.s32 1, %v29_v4  ;;  %v38_v16 = vsub.s32 2, %v29_v4  ;;  %v42_v17 = vsub.s32 3, %v29_v4 }
   0x5   :  { %v46_v18 = vsub.s32 4, %v29_v4  ;;  %v50_v19 = vsub.s32 5, %v29_v4  ;;  %v25_v21 = vunpack.c.h.bf16 %v17_v7  ;;  %v54_v44 = vsub.s32 6, %v29_v4 }
   0x6   :  { %v31_v22 = vrot.slane %v26_v8, %v30_v14  ;;  %v35_v23 = vrot.slane %v26_v8, %v34_v15  ;;  %v81_v24 = vrot.slane %v76_v9, %v30_v14  ;;  %v85_v25 = vrot.slane %v76_v9, %v34_v15 }
   0x7   :  { %v39_v26 = vrot.slane %v26_v8, %v38_v16  ;;  %v43_v27 = vrot.slane %v26_v8, %v42_v17  ;;  %v89_v28 = vrot.slane %v76_v9, %v38_v16  ;;  %v93_v29 = vrot.slane %v76_v9, %v42_v17 }
   0x8   :  { %v68_v30 = vmul.f32 %v31_v22, %v18_v2  ;;  %v69_v31 = vmul.f32 %v35_v23, %v19_v3  ;;  %v47_v32 = vrot.slane %v26_v8, %v46_v18  ;;  %v51_v33 = vrot.slane %v26_v8, %v50_v19 }
   0x9   :  { %v70_v34 = vmul.f32 %v39_v26, %v20_v10  ;;  %v71_v35 = vmul.f32 %v43_v27, %v21_v11  ;;  %v97_v36 = vrot.slane %v76_v9, %v46_v18  ;;  %v101_v37 = vrot.slane %v76_v9, %v50_v19 }
   0xa   :  { %v118_v38 = vadd.f32 %v81_v24, %v68_v30  ;;  %v119_v39 = vadd.f32 %v85_v25, %v69_v31  ;;  %v72_v40 = vmul.f32 %v47_v32, %v22_v12  ;;  %v73_v41 = vmul.f32 %v51_v33, %v23_v13 }
   0xb   :  { %v120_v42 = vadd.f32 %v89_v28, %v70_v34  ;;  %v121_v43 = vadd.f32 %v93_v29, %v71_v35  ;;  %v58_v45 = vsub.s32 7, %v29_v4  ;;  %v55_v52 = vrot.slane %v26_v8, %v54_v44 }
   0xc   :  { %v126_v46 = vmax.f32 %v118_v38, 0.0  ;;  %v127_v47 = vmax.f32 %v119_v39, 0.0  ;;  %v122_v48 = vadd.f32 %v97_v36, %v72_v40  ;;  %v123_v49 = vadd.f32 %v101_v37, %v73_v41 }
   0xd   :  { %v128_v50 = vmax.f32 %v120_v42, 0.0  ;;  %v129_v51 = vmax.f32 %v121_v43, 0.0  ;;  %v59_v53 = vrot.slane %v26_v8, %v58_v45  ;;  %v105_v57 = vrot.slane %v76_v9, %v54_v44 }
   0xe   :  { %v178_v54 = vpack.c.bf16 %v127_v47, %v126_v46  ;;  %v130_v55 = vmax.f32 %v122_v48, 0.0  ;;  %v131_v56 = vmax.f32 %v123_v49, 0.0  ;;  %v74_v59 = vmul.f32 %v55_v52, %v24_v20 }
   0xf   :  { %v179_v58 = vpack.c.bf16 %v129_v51, %v128_v50  ;;  %v75_v60 = vmul.f32 %v59_v53, %v25_v21  ;;  %v109_v61 = vrot.slane %v76_v9, %v58_v45 }
  0x10   :  { %166 = vst [vmem:[%s235_s3] sm:$0xff] %v178_v54  ;;  %v180_v62 = vpack.c.bf16 %v131_v56, %v130_v55  ;;  %v124_v63 = vadd.f32 %v105_v57, %v74_v59 }
  0x11   :  { %167 = vst [vmem:[%s235_s3 + $0x8] sm:$0xff] %v179_v58  ;;  %v125_v0 = vadd.f32 %v109_v61, %v75_v60 }
  0x12   :  { %168 = vst [vmem:[%s235_s3 + $0x10] sm:$0xff] %v180_v62  ;;  %v132_v1 = vmax.f32 %v124_v63, 0.0 }
  0x13   :  { %v133_v2 = vmax.f32 %v125_v0, 0.0 }
  0x15   :  { %v181_v3 = vpack.c.bf16 %v133_v2, %v132_v1 }
  0x17   :  { %169 = vst [vmem:[%s235_s3 + $0x18] sm:$0xff] %v181_v3 }

// kernel: tile.57
= control target key start
LH: loop header
LB: loop body
LE: loop exit
PB: predicated region body
PF: predicated region fallthrough
CT: control target
= control target key end

     0   :  { %s22_s0 = inlined_call_operand.vmem [shape: f32[32], index: 0, kind: input, shape index: {}]   ;;  %s23_s1 = inlined_call_operand.vmem [shape: f32[4,32], index: 1, kind: output, shape index: {}]  }
   0x1   :  { %v4_v0 = vld [vmem:[%s22_s0] ss:$0 sm:$0xff] }
   0x2   :  { %5 = vst [vmem:[%s23_s1] sm:$0xf] %v4_v0 }

// kernel: tile.59
= control target key start
LH: loop header
LB: loop body
LE: loop exit
PB: predicated region body
PF: predicated region fallthrough
CT: control target
= control target key end

     0   :  { %vm7_vm0 = vcmask 261120   ;;  %s37_s8 = smov 32   ;;  %s38_s9 = smov 64   ;;  %vm13_vm1 = vcmask 1048320   ;;  %vm19_vm2 = vcmask 785920   ;;  %vm25_vm3 = vcmask 523520   ;;  %s55_s0 = inlined_call_operand.vmem [shape: f32[4,32], index: 0, kind: input, shape index: {}]   ;;  %s56_s1 = inlined_call_operand.vmem [shape: f32[1,128], index: 1, kind: output, shape index: {}]  }
   0x1   :  { %v4_v0 = vld [vmem:[%s55_s0] sm:$0xf]  ;;  %s36_s0 = smov 96  }
   0x2   :  { %5 = vst [vmem:[#allocation1] sm:$0xf] %v4_v0 }
   0x9   :  { %v10_v1 = vld [vmem:[#allocation1 + $0x3] sm:$0x1]   ;;  %v22_v2 = vld [vmem:[#allocation1 + $0x1] sm:$0x1]   ;;  %v6_v3 = vld [vmem:[#allocation1] sm:$0x1]  }
   0xa   :  { %11 = vrot.lane.b32.xlu0 %v10_v1, %s36_s0  ;;  %23 = vrot.lane.b32.xlu1 %v22_v2, %s37_s8  ;;  %v16_v4 = vld [vmem:[#allocation1 + $0x2] sm:$0x1]   ;;  %8 = vst.msk [vmem:[#allocation0] sm:$0x1] %vm7_vm0, %v6_v3  }
   0xe   :  { %17 = vrot.lane.b32.xlu0 %v16_v4, %s38_s9 }
  0x7c   :  { %v12_v5 = vpop.permute.xlu0 %11   ;;  %v24_v6 = vpop.permute.xlu1 %23  }
  0x7d   :  { %14 = vst.msk [vmem:[#allocation0] sm:$0x1] %vm13_vm1, %v12_v5  }
  0x80   :  { %v18_v7 = vpop.permute.xlu0 %17  }
  0x81   :  { %20 = vst.msk [vmem:[#allocation0] sm:$0x1] %vm19_vm2, %v18_v7  }
  0x82   :  { %26 = vst.msk [vmem:[#allocation0] sm:$0x1] %vm25_vm3, %v24_v6  }
  0x89   :  { %v30_v8 = vld [vmem:[#allocation0] sm:$0x1] }
  0x8a   :  { %32 = vst [vmem:[%s56_s1] sm:$0x1] %v30_v8 }

// kernel: _forward.11
= control target key start
LH: loop header
LB: loop body
LE: loop exit
PB: predicated region body
PF: predicated region fallthrough
CT: control target
= control target key end

     0   :  { %10 = vsyncpa [#allocation3], 0  ;;  %s512_s15 = smov [#allocation2]   ;;  %s591_s0 = inlined_call_operand.vmem [shape: bf16[56,256], index: 0, kind: input, shape index: {}]   ;;  %s592_s1 = inlined_call_operand.hbm [shape: bf16[256,128], index: 1, kind: input, shape index: {}]   ;;  %s593_s2 = inlined_call_operand.vmem [shape: bf16[56,128], index: 2, kind: output, shape index: {0}]   ;;  %s594_s3 = inlined_call_operand.vmem [shape: f32[1,1,128], index: 3, kind: output, shape index: {1}]   ;;  %s595_s4 = inlined_call_operand.vmem [shape: f32[1,1,128], index: 4, kind: output, shape index: {2}]  }
   0x1   :  { %s18_s16 = sshll.u32 %s512_s15, 4  ;;  %s488_s19 = scalar_lea.hbm %s592_s1, 2048  ;;  %s19_s16 = int_to_ptr.vmem [resolvable:$true] %s18_s16 }
   0x2   :  { %p489_p0 = scmp.ne.s32.totalorder %s592_s1, %s488_s19  ;;  %p492_p1 = scmp.lt.u32.totalorder %s488_s19, %s592_s1 }
   0x4   :  { %p494_p2 = pnand %p492_p1, %p489_p0 }
   0x6   :  { %497 = shalt.err (!%p494_p2)
}
   0x7   :  { %s498_s24 = scalar_lea.vmem %s19_s16, 2048  ;;  %p503_p4 = scmp.lt.s32.totalorder %s19_s16, %s19_s16 }
   0x8   :  { %p499_p3 = scmp.ne.s32.totalorder %s19_s16, %s498_s24  ;;  %p504_p5 = scmp.lt.s32.totalorder %s498_s24, %s498_s24 }
   0xa   :  { %p505_p6 = por %p504_p5, %p503_p4 }
   0xc   :  { %p506_p7 = pnand %p505_p6, %p499_p3 }
   0xe   :  { %509 = shalt.err (!%p506_p7)
}
   0xf   :  { %s513_s25 = smov 64   ;;  %s514_s26 = smov 4  }
  0x10   :  { %24 = dma.hbm_to_vmem [thread:$0]  %s592_s1, 2048, %s19_s16, [#allocation3], %s513_s25, %s513_s25, %s514_s26  }
  0x11   :  { %510 = dma.done.wait [#allocation3], 2048  }
  0x12   :  { %511 = vsyncadd [#allocation3], 4294965248  ;;  %v461_v0 = vld [vmem:[#allocation2 + $0x40] sm:$0xff]   ;;  %v463_v2 = vld [vmem:[#allocation2 + $0x48] sm:$0xff]  }
  0x13   :  { %v462_v1 = vld [vmem:[#allocation2] sm:$0xff]   ;;  %402 = vmatprep.subr.bf16.mxu0 %v461_v0  ;;  %442 = vmatprep.subr.bf16.mxu1 %v461_v0  ;;  %v464_v3 = vld [vmem:[#allocation2 + $0x8] sm:$0xff]   ;;  %v465_v4 = vld [vmem:[#allocation2 + $0x50] sm:$0xff]  }
  0x14   :  { %403 = vmatpush3.bf16.msra.mxu0 %v462_v1  ;;  %450 = vmatpush3.bf16.msra.mxu1 %v462_v1  ;;  %v466_v5 = vld [vmem:[#allocation2 + $0x10] sm:$0xff]   ;;  %v467_v6 = vld [vmem:[#allocation2 + $0x58] sm:$0xff]   ;;  %v469_v8 = vld [vmem:[#allocation2 + $0x60] sm:$0xff]  }
  0x15   :  { %404 = vmatprep.subr.bf16.mxu0 %v463_v2  ;;  %443 = vmatprep.subr.bf16.mxu1 %v463_v2  ;;  %v468_v7 = vld [vmem:[#allocation2 + $0x18] sm:$0xff]   ;;  %v470_v9 = vld [vmem:[#allocation2 + $0x20] sm:$0xff]   ;;  %v471_v10 = vld [vmem:[#allocation2 + $0x68] sm:$0xff]  }
  0x16   :  { %v479_v11 = vld [vmem:[%s591_s0 + $0x4] ss:$8 sps:$4 sm:$0xff]   ;;  %v473_v14 = vld [vmem:[#allocation2 + $0x70] sm:$0xff]   ;;  %v475_v16 = vld [vmem:[#allocation2 + $0x78] sm:$0xff]  }
  0x17   :  { %v482_v12 = vld [vmem:[%s591_s0 + $0x24] ss:$8 sps:$4 sm:$0xff]   ;;  %233 = vmatprep.mubr.bf16.mxu0 %v479_v11  ;;  %v474_v15 = vld [vmem:[#allocation2 + $0x30] sm:$0xff]   ;;  %v476_v17 = vld [vmem:[#allocation2 + $0x38] sm:$0xff]  }
  0x18   :  { %405 = vmatpush3.bf16.msra.mxu0 %v464_v3  ;;  %451 = vmatpush3.bf16.msra.mxu1 %v464_v3  ;;  %v472_v13 = vld [vmem:[#allocation2 + $0x28] sm:$0xff]   ;;  %v35_v18 = vld [vmem:[%s591_s0 + $0x30] sm:$0xff] }
  0x19   :  { %406 = vmatprep.subr.bf16.mxu0 %v465_v4  ;;  %444 = vmatprep.subr.bf16.mxu1 %v465_v4  ;;  %v477_v19 = vld [vmem:[%s591_s0] ss:$8 sps:$4 sm:$0xff]   ;;  %v483_v21 = vld [vmem:[%s591_s0 + $0x14] ss:$8 sps:$4 sm:$0xff]   ;;  %v354_v22 = vcombine.high %v35_v18, %v35_v18  ;;  %v485_v23 = vld [vmem:[%s591_s0 + $0x10] ss:$8 sps:$4 sm:$0xff]   ;;  %v353_v24 = vcombine.low %v35_v18, %v35_v18 }
  0x1a   :  { %249 = vmatprep.mubr.bf16.mxu1 %v482_v12  ;;  %v480_v20 = vld [vmem:[%s591_s0 + $0x20] ss:$8 sps:$4 sm:$0xff]  }
  0x1c   :  { %407 = vmatpush3.bf16.msra.mxu0 %v466_v5  ;;  %452 = vmatpush3.bf16.msra.mxu1 %v466_v5 }
  0x1d   :  { %408 = vmatprep.subr.bf16.mxu0 %v467_v6  ;;  %445 = vmatprep.subr.bf16.mxu1 %v467_v6 }
  0x20   :  { %409 = vmatpush3.bf16.msra.mxu0 %v468_v7  ;;  %453 = vmatpush3.bf16.msra.mxu1 %v468_v7 }
  0x21   :  { %410 = vmatprep.subr.bf16.mxu0 %v469_v8  ;;  %446 = vmatprep.subr.bf16.mxu1 %v469_v8 }
  0x24   :  { %411 = vmatpush3.bf16.msra.mxu0 %v470_v9  ;;  %454 = vmatpush3.bf16.msra.mxu1 %v470_v9 }
  0x25   :  { %412 = vmatprep.subr.bf16.mxu0 %v471_v10  ;;  %447 = vmatprep.subr.bf16.mxu1 %v471_v10 }
  0x28   :  { %413 = vmatpush3.bf16.msra.mxu0 %v472_v13  ;;  %455 = vmatpush3.bf16.msra.mxu1 %v472_v13 }
  0x29   :  { %414 = vmatprep.subr.bf16.mxu0 %v473_v14  ;;  %448 = vmatprep.subr.bf16.mxu1 %v473_v14 }
  0x2c   :  { %415 = vmatpush3.bf16.msra.mxu0 %v474_v15  ;;  %456 = vmatpush3.bf16.msra.mxu1 %v474_v15 }
  0x2d   :  { %416 = vmatprep.subr.bf16.mxu0 %v475_v16  ;;  %449 = vmatprep.subr.bf16.mxu1 %v475_v16 }
  0x30   :  { %417 = vmatpush3.bf16.msra.mxu0 %v476_v17  ;;  %457 = vmatpush3.bf16.msra.mxu1 %v476_v17 }
  0x33   :  { %234 = vmatmul.mubr.bf16.vlgmr.msra.gmra.mrb[0].mxu0 %v477_v19  ;;  %250 = vmatmul.mubr.bf16.vlgmr.msra.gmra.mrb[0].mxu1 %v480_v20 }
  0x34   :  { %241 = vmatprep.mubr.bf16.mxu0 %v483_v21  ;;  %257 = vmatprep.mubr.bf16.mxu1 %v354_v22 }
  0x3b   :  { %242 = vmatmul.mubr.bf16.gmra.mrb[4].mxu0 %v485_v23  ;;  %258 = vmatmul.mubr.bf16.gmra.mrb[4].mxu1 %v353_v24 }
 0x106   :  { %v418_v25 = vpop.f32.mrb[0].mxu0  ;;  %v430_v26 = vpop.f32.mrb[0].mxu1 }
 0x107   :  { %v419_v27 = vpop.f32.mrb[1].mxu0  ;;  %v431_v28 = vpop.f32.mrb[1].mxu1 }
 0x108   :  { %v420_v29 = vadd.f32 %v419_v27, %v418_v25  ;;  %v421_v30 = vpop.f32.mrb[2].mxu0  ;;  %v432_v31 = vadd.f32 %v431_v28, %v430_v26  ;;  %v433_v32 = vpop.f32.mrb[2].mxu1 }
 0x109   :  { %v422_v33 = vpop.f32.mrb[3].mxu0  ;;  %v434_v34 = vpop.f32.mrb[3].mxu1 }
 0x10a   :  { %v423_v35 = vadd.f32 %v422_v33, %v421_v30  ;;  %v435_v36 = vadd.f32 %v434_v34, %v433_v32  ;;  %v314_v37 = vmul.f32 %v420_v29, %v420_v29  ;;  %v318_v61 = vmul.f32 %v432_v31, %v432_v31 }
 0x10c   :  { %v388_v38 = vpack.c.bf16 %v423_v35, %v420_v29  ;;  %v301_v39 = vadd.f32 %v423_v35, %v420_v29  ;;  %v315_v40 = vmul.f32 %v423_v35, %v423_v35  ;;  %v398_v41 = vpack.c.bf16 %v435_v36, %v432_v31 }
 0x10d   :  { %v319_v0 = vmul.f32 %v435_v36, %v435_v36 }
 0x10e   :  { %389 = vst [vmem:[%s593_s2] sm:$0xff] %v388_v38   ;;  %v321_v42 = vadd.f32 %v315_v40, %v314_v37  ;;  %v424_v43 = vpop.f32.mrb[4].mxu0  ;;  %401 = vst [vmem:[%s593_s2 + $0x10] sm:$0xff] %v398_v41   ;;  %v436_v44 = vpop.f32.mrb[4].mxu1 }
 0x10f   :  { %v425_v45 = vpop.f32.mrb[5].mxu0  ;;  %v437_v46 = vpop.f32.mrb[5].mxu1 }
 0x110   :  { %v426_v47 = vadd.f32 %v425_v45, %v424_v43  ;;  %v427_v48 = vpop.f32.mrb[6].mxu0  ;;  %v438_v49 = vadd.f32 %v437_v46, %v436_v44  ;;  %v439_v50 = vpop.f32.mrb[6].mxu1 }
 0x111   :  { %v428_v51 = vpop.f32.mrb[7].mxu0  ;;  %v440_v52 = vpop.f32.mrb[7].mxu1 }
 0x112   :  { %v302_v53 = vadd.f32 %v426_v47, %v301_v39  ;;  %v316_v54 = vmul.f32 %v426_v47, %v426_v47  ;;  %v429_v55 = vadd.f32 %v428_v51, %v427_v48  ;;  %v384_v56 = vpack.c.bf16 %v438_v49, %v438_v49 }
 0x113   :  { %v320_v3 = vmul.f32 %v438_v49, %v438_v49 }
 0x114   :  { %v322_v57 = vadd.f32 %v321_v42, %v316_v54  ;;  %v393_v58 = vpack.c.bf16 %v429_v55, %v426_v47  ;;  %v303_v59 = vadd.f32 %v429_v55, %v302_v53  ;;  %v317_v60 = vmul.f32 %v429_v55, %v429_v55  ;;  %300 = vst [vmem:[%s593_s2 + $0x18] sm:$0xf] %v384_v56 }
 0x116   :  { %400 = vst [vmem:[%s593_s2 + $0x8] sm:$0xff] %v393_v58   ;;  %v304_v62 = vadd.f32 %v432_v31, %v303_v59  ;;  %v323_v63 = vadd.f32 %v322_v57, %v317_v60 }
 0x118   :  { %v324_v1 = vadd.f32 %v323_v63, %v318_v61  ;;  %v305_v2 = vadd.f32 %v435_v36, %v304_v62 }
 0x11a   :  { %v306_v4 = vadd.f32 %v438_v49, %v305_v2  ;;  %v325_v5 = vadd.f32 %v324_v1, %v319_v0 }
 0x11c   :  { %v307_v6 = vrot.slane %v306_v4, 4  ;;  %v326_v7 = vadd.f32 %v325_v5, %v320_v3 }
 0x11e   :  { %v308_v8 = vadd.f32 %v307_v6, %v306_v4  ;;  %v327_v9 = vrot.slane %v326_v7, 4 }
 0x120   :  { %v309_v10 = vrot.slane %v308_v8, 2  ;;  %v328_v11 = vadd.f32 %v327_v9, %v326_v7 }
 0x122   :  { %v310_v12 = vadd.f32 %v309_v10, %v308_v8  ;;  %v329_v13 = vrot.slane %v328_v11, 2 }
 0x124   :  { %v311_v14 = vrot.slane %v310_v12, 1  ;;  %v330_v15 = vadd.f32 %v329_v13, %v328_v11 }
 0x126   :  { %v312_v16 = vadd.f32 %v311_v14, %v310_v12  ;;  %v331_v17 = vrot.slane %v330_v15, 1 }
 0x128   :  { %313 = vst [vmem:[%s594_s3] sm:$0x1] %v312_v16  ;;  %v332_v18 = vadd.f32 %v331_v17, %v330_v15 }
 0x12a   :  { %333 = vst [vmem:[%s595_s4] sm:$0x1] %v332_v18 }
 0x12b   :  { %346 = vsyncpa [#allocation3], 1 }

// kernel: _forward.12
= control target key start
LH: loop header
LB: loop body
LE: loop exit
PB: predicated region body
PF: predicated region fallthrough
CT: control target
= control target key end

     0   :  { %s200_s0 = inlined_call_operand.vmem [shape: bf16[56,128], index: 0, kind: input, shape index: {}]   ;;  %s201_s1 = inlined_call_operand.vmem [shape: f32[1,128], index: 1, kind: input, shape index: {}]   ;;  %s202_s2 = inlined_call_operand.vmem [shape: f32[1,128], index: 2, kind: input, shape index: {}]   ;;  %s203_s3 = inlined_call_operand.vmem [shape: bf16[56,128], index: 3, kind: output, shape index: {}]  }
   0x1   :  { %v120_v0 = vld [vmem:[%s200_s0] sm:$0xff]   ;;  %v146_v4 = vld [vmem:[%s200_s0 + $0x8] sm:$0xff]   ;;  %v147_v5 = vld [vmem:[%s200_s0 + $0x10] sm:$0xff]  }
   0x2   :  { %v103_v1 = vld [vmem:[%s201_s1] ss:$0 sm:$0xff]  ;;  %v121_v2 = vunpack.c.l.bf16 %v120_v0  ;;  %v122_v3 = vunpack.c.h.bf16 %v120_v0  ;;  %v20_v6 = vld [vmem:[%s200_s0 + $0x18] sm:$0xf]  ;;  %v125_v8 = vunpack.c.l.bf16 %v146_v4  ;;  %v126_v9 = vunpack.c.h.bf16 %v146_v4 }
   0x3   :  { %v104_v7 = vld [vmem:[%s202_s2] ss:$0 sm:$0xff]  ;;  %v129_v10 = vunpack.c.l.bf16 %v147_v5  ;;  %v130_v11 = vunpack.c.h.bf16 %v147_v5  ;;  %v27_v14 = vunpack.c.l.bf16 %v20_v6 }
   0x4   :  { %v35_v12 = vmul.f32 %v121_v2, %v103_v1  ;;  %v36_v13 = vmul.f32 %v122_v3, %v103_v1  ;;  %v37_v15 = vmul.f32 %v125_v8, %v103_v1  ;;  %v38_v16 = vmul.f32 %v126_v9, %v103_v1 }
   0x5   :  { %v39_v17 = vmul.f32 %v129_v10, %v103_v1  ;;  %v40_v18 = vmul.f32 %v130_v11, %v103_v1  ;;  %v41_v21 = vmul.f32 %v103_v1, %v27_v14 }
   0x6   :  { %v49_v19 = vadd.f32 %v104_v7, %v35_v12  ;;  %v50_v20 = vadd.f32 %v104_v7, %v36_v13  ;;  %v51_v22 = vadd.f32 %v104_v7, %v37_v15  ;;  %v52_v23 = vadd.f32 %v104_v7, %v38_v16 }
   0x7   :  { %v53_v24 = vadd.f32 %v104_v7, %v39_v17  ;;  %v54_v25 = vadd.f32 %v104_v7, %v40_v18  ;;  %v55_v28 = vadd.f32 %v104_v7, %v41_v21 }
   0x8   :  { %v56_v26 = vmax.f32 %v49_v19, 0.0  ;;  %v57_v27 = vmax.f32 %v50_v20, 0.0  ;;  %v58_v29 = vmax.f32 %v51_v22, 0.0  ;;  %v59_v30 = vmax.f32 %v52_v23, 0.0 }
   0x9   :  { %v60_v31 = vmax.f32 %v53_v24, 0.0  ;;  %v61_v32 = vmax.f32 %v54_v25, 0.0  ;;  %v62_v34 = vmax.f32 %v55_v28, 0.0 }
   0xa   :  { %v134_v33 = vpack.c.bf16 %v57_v27, %v56_v26  ;;  %v139_v35 = vpack.c.bf16 %v59_v30, %v58_v29 }
   0xb   :  { %v144_v36 = vpack.c.bf16 %v61_v32, %v60_v31  ;;  %v118_v37 = vpack.c.bf16 %v62_v34, %v62_v34 }
   0xc   :  { %135 = vst [vmem:[%s203_s3] sm:$0xff] %v134_v33   ;;  %148 = vst [vmem:[%s203_s3 + $0x8] sm:$0xff] %v139_v35  }
   0xd   :  { %149 = vst [vmem:[%s203_s3 + $0x10] sm:$0xff] %v144_v36   ;;  %98 = vst [vmem:[%s203_s3 + $0x18] sm:$0xf] %v118_v37 }

// kernel: _forward.13
= control target key start
LH: loop header
LB: loop body
LE: loop exit
PB: predicated region body
PF: predicated region fallthrough
CT: control target
= control target key end

     0   :  { %s917_s15 = smov 0   ;;  %s996_s0 = inlined_call_operand.vmem [shape: bf16[256,128], index: 0, kind: input, shape index: {}]   ;;  %s997_s1 = inlined_call_operand.vmem [shape: bf16[128,128], index: 1, kind: input, shape index: {}]   ;;  %s998_s2 = inlined_call_operand.vmem [shape: bf16[256,128], index: 2, kind: output, shape index: {0}]   ;;  %s999_s3 = inlined_call_operand.vmem [shape: f32[2,1,128], index: 3, kind: output, shape index: {1}]   ;;  %s1000_s4 = inlined_call_operand.vmem [shape: f32[2,1,128], index: 4, kind: output, shape index: {2}]  }
   0x1 LB: > { %s923_s16 = sadd.s32 4294967295, %s890_s15   ;;  %p694_p0 = scmp.ge.s32.totalorder %s890_s15, 1  ;;  %s890_s15 = sphi %s917_s15, %s15_s15  }
   0x2   : > { %p168_p1 = scmp.lt.s32.totalorder %s890_s15, 3 }
   0x4   : > { %p169_p2 = pnand %p694_p0, %p168_p1 }
   0x5   : > { %v868_v0 = vld [vmem:[%s997_s1] sm:$0xff] (!%p169_p2)   ;;  %s695_s19 = sshll.u32 (!%p169_p2), %s923_s16, 4  ;;  %v869_v1 = vld [vmem:[%s997_s1 + $0x8] sm:$0xff] (!%p169_p2)   ;;  %v870_v2 = vld [vmem:[%s997_s1 + $0x10] sm:$0xff] (!%p169_p2)   ;;  %p212_p4 = scmp.lt.s32.totalorder (!%p169_p2), %s923_s16, 1 }
   0x6   : > { %172 = sbr.rel (%p169_p2) target bundleno = 298 (0x12a), region = 28  ;;  %p201_p3 = scmp.lt.s32.totalorder (!%p169_p2), %s695_s19, 31  ;;  %812 = vmatprep.subr.bf16.mxu0 (!%p169_p2), %v868_v0  ;;  %844 = vmatprep.subr.bf16.mxu1 (!%p169_p2), %v868_v0  ;;  %v871_v3 = vld [vmem:[%s997_s1 + $0x18] sm:$0xff] (!%p169_p2)   ;;  %v872_v5 = vld [vmem:[%s997_s1 + $0x20] sm:$0xff] (!%p169_p2)   ;;  %v873_v7 = vld [vmem:[%s997_s1 + $0x28] sm:$0xff] (!%p169_p2)  }
   0x7   : > { %813 = vmatpush3.bf16.msra.mxu0 (!%p169_p2), %v868_v0  ;;  %852 = vmatpush3.bf16.msra.mxu1 (!%p169_p2), %v868_v0  ;;  %v874_v8 = vld [vmem:[%s997_s1 + $0x30] sm:$0xff] (!%p169_p2)   ;;  %v875_v9 = vld [vmem:[%s997_s1 + $0x38] sm:$0xff] (!%p169_p2)  }
   0x8   : > { %814 = vmatprep.subr.bf16.mxu0 (!%p169_p2), %v869_v1  ;;  %845 = vmatprep.subr.bf16.mxu1 (!%p169_p2), %v869_v1 }
   0xb   : > { %815 = vmatpush3.bf16.msra.mxu0 (!%p169_p2), %v869_v1  ;;  %853 = vmatpush3.bf16.msra.mxu1 (!%p169_p2), %v869_v1 }
   0xc   : > { %816 = vmatprep.subr.bf16.mxu0 (!%p169_p2), %v870_v2  ;;  %846 = vmatprep.subr.bf16.mxu1 (!%p169_p2), %v870_v2 }
   0xd   : > { %s1002_s19 = smov (!%p201_p3, %s695_s19), 31  ;;  %s1004_s16 = smov (!%p212_p4, %s923_s16), 1 }
   0xe   : > { %s696_s24 = sshll.u32 %s1002_s19, 2  ;;  %s214_s19 = scalar_lea.vmem %s999_s3, %s1004_s16 }
   0xf   : > { %s945_s27 = scalar_lea.vmem %s996_s0, %s696_s24  ;;  %817 = vmatpush3.bf16.msra.mxu0 %v870_v2  ;;  %854 = vmatpush3.bf16.msra.mxu1 %v870_v2  ;;  %s975_s14 = scalar_lea.vmem %s998_s2, %s696_s24 }
  0x10   : > { %v876_v4 = vld [vmem:[%s945_s27] sm:$0xff]   ;;  %818 = vmatprep.subr.bf16.mxu0 %v871_v3  ;;  %847 = vmatprep.subr.bf16.mxu1 %v871_v3  ;;  %v877_v10 = vld [vmem:[%s945_s27 + $0x8] sm:$0xff]   ;;  %v878_v12 = vld [vmem:[%s945_s27 + $0x10] sm:$0xff]   ;;  %s217_s22 = scalar_lea.vmem %s1000_s4, %s1004_s16 }
  0x11   : > { %828 = vmatprep.mubr.bf16.mxu0 %v876_v4  ;;  %v880_v6 = vld [vmem:[%s945_s27 + $0x20] sm:$0xff]   ;;  %v881_v11 = vld [vmem:[%s945_s27 + $0x28] sm:$0xff]   ;;  %v882_v13 = vld [vmem:[%s945_s27 + $0x30] sm:$0xff]  }
  0x12   : > { %836 = vmatprep.mubr.bf16.mxu1 %v880_v6  ;;  %v879_v14 = vld [vmem:[%s945_s27 + $0x18] sm:$0xff]  }
  0x13   : > { %819 = vmatpush3.bf16.msra.mxu0 %v871_v3  ;;  %855 = vmatpush3.bf16.msra.mxu1 %v871_v3  ;;  %v883_v15 = vld [vmem:[%s945_s27 + $0x38] sm:$0xff]  }
  0x14   : > { %820 = vmatprep.subr.bf16.mxu0 %v872_v5  ;;  %848 = vmatprep.subr.bf16.mxu1 %v872_v5 }
  0x17   : > { %821 = vmatpush3.bf16.msra.mxu0 %v872_v5  ;;  %856 = vmatpush3.bf16.msra.mxu1 %v872_v5 }
  0x18   : > { %822 = vmatprep.subr.bf16.mxu0 %v873_v7  ;;  %849 = vmatprep.subr.bf16.mxu1 %v873_v7 }
  0x1b   : > { %823 = vmatpush3.bf16.msra.mxu0 %v873_v7  ;;  %857 = vmatpush3.bf16.msra.mxu1 %v873_v7 }
  0x1c   : > { %824 = vmatprep.subr.bf16.mxu0 %v874_v8  ;;  %850 = vmatprep.subr.bf16.mxu1 %v874_v8 }
  0x1f   : > { %825 = vmatpush3.bf16.msra.mxu0 %v874_v8  ;;  %858 = vmatpush3.bf16.msra.mxu1 %v874_v8 }
  0x20   : > { %826 = vmatprep.subr.bf16.mxu0 %v875_v9  ;;  %851 = vmatprep.subr.bf16.mxu1 %v875_v9 }
  0x23   : > { %827 = vmatpush3.bf16.msra.mxu0 %v875_v9  ;;  %859 = vmatpush3.bf16.msra.mxu1 %v875_v9 }
  0x26   : > { %829 = vmatmul.mubr.bf16.vlgmr.msra.gmra.mrb[0].mxu0 %v877_v10  ;;  %837 = vmatmul.mubr.bf16.vlgmr.msra.gmra.mrb[0].mxu1 %v881_v11 }
  0x27   : > { %832 = vmatprep.mubr.bf16.mxu0 %v878_v12  ;;  %840 = vmatprep.mubr.bf16.mxu1 %v882_v13 }
  0x2e   : > { %833 = vmatmul.mubr.bf16.gmra.mrb[4].mxu0 %v879_v14  ;;  %841 = vmatmul.mubr.bf16.gmra.mrb[4].mxu1 %v883_v15 }
  0xf9   : > { %v830_v16 = vpop.f32.mrb[0].mxu0  ;;  %v838_v17 = vpop.f32.mrb[0].mxu1 }
  0xfa   : > { %v381_v18 = vpop.f32.mrb[1].mxu0  ;;  %v413_v19 = vpop.f32.mrb[1].mxu1  ;;  %v548_v31 = vmul.f32 %v830_v16, %v830_v16  ;;  %v556_v3 = vmul.f32 %v838_v17, %v838_v17 }
  0xfb   : > { %v831_v20 = vpop.f32.mrb[2].mxu0  ;;  %v839_v21 = vpop.f32.mrb[2].mxu1  ;;  %v546_v22 = vmul.f32 %v381_v18, %v381_v18  ;;  %v554_v61 = vmul.f32 %v413_v19, %v413_v19 }
  0xfc   : > { %v757_v23 = vpack.c.bf16 %v831_v20, %v830_v16  ;;  %v384_v24 = vpop.f32.mrb[3].mxu0  ;;  %v777_v25 = vpack.c.bf16 %v839_v21, %v838_v17  ;;  %v416_v26 = vpop.f32.mrb[3].mxu1  ;;  %v549_v34 = vmul.f32 %v831_v20, %v831_v20  ;;  %v557_v6 = vmul.f32 %v839_v21, %v839_v21 }
  0xfd   : > { %v752_v27 = vpack.c.bf16 %v384_v24, %v381_v18  ;;  %v524_v28 = vadd.f32 %v384_v24, %v381_v18  ;;  %v547_v29 = vmul.f32 %v384_v24, %v384_v24  ;;  %v772_v30 = vpack.c.bf16 %v416_v26, %v413_v19 }
  0xfe   : > { %789 = vst [vmem:[%s975_s14 + $0x8] sm:$0xff] %v757_v23   ;;  %793 = vst [vmem:[%s975_s14 + $0x28] sm:$0xff] %v777_v25   ;;  %v555_v2 = vmul.f32 %v416_v26, %v416_v26 }
  0xff   : > { %753 = vst [vmem:[%s975_s14] sm:$0xff] %v752_v27   ;;  %v525_v32 = vadd.f32 %v830_v16, %v524_v28  ;;  %v562_v33 = vadd.f32 %v547_v29, %v546_v22  ;;  %792 = vst [vmem:[%s975_s14 + $0x20] sm:$0xff] %v772_v30  }
 0x101   : > { %v563_v35 = vadd.f32 %v562_v33, %v548_v31  ;;  %v834_v36 = vpop.f32.mrb[4].mxu0  ;;  %v526_v37 = vadd.f32 %v831_v20, %v525_v32  ;;  %v842_v38 = vpop.f32.mrb[4].mxu1 }
 0x102   : > { %v397_v39 = vpop.f32.mrb[5].mxu0  ;;  %v429_v40 = vpop.f32.mrb[5].mxu1  ;;  %v552_v55 = vmul.f32 %v834_v36, %v834_v36  ;;  %v560_v15 = vmul.f32 %v842_v38, %v842_v38 }
 0x103   : > { %v527_v41 = vadd.f32 %v526_v37, %v397_v39  ;;  %v550_v42 = vmul.f32 %v397_v39, %v397_v39  ;;  %v564_v43 = vadd.f32 %v563_v35, %v549_v34  ;;  %v835_v44 = vpop.f32.mrb[6].mxu0  ;;  %v843_v45 = vpop.f32.mrb[6].mxu1  ;;  %v558_v9 = vmul.f32 %v429_v40, %v429_v40 }
 0x104   : > { %v767_v46 = vpack.c.bf16 %v835_v44, %v834_v36  ;;  %v400_v47 = vpop.f32.mrb[7].mxu0  ;;  %v787_v48 = vpack.c.bf16 %v843_v45, %v842_v38  ;;  %v432_v49 = vpop.f32.mrb[7].mxu1  ;;  %v553_v58 = vmul.f32 %v835_v44, %v835_v44 }
 0x105   : > { %v565_v50 = vadd.f32 %v564_v43, %v550_v42  ;;  %v762_v51 = vpack.c.bf16 %v400_v47, %v397_v39  ;;  %v528_v52 = vadd.f32 %v527_v41, %v400_v47  ;;  %v551_v53 = vmul.f32 %v400_v47, %v400_v47 }
 0x106   : > { %791 = vst [vmem:[%s975_s14 + $0x18] sm:$0xff] %v767_v46   ;;  %795 = vst [vmem:[%s975_s14 + $0x38] sm:$0xff] %v787_v48   ;;  %v782_v54 = vpack.c.bf16 %v432_v49, %v429_v40  ;;  %v559_v14 = vmul.f32 %v432_v49, %v432_v49 }
 0x107   : > { %790 = vst [vmem:[%s975_s14 + $0x10] sm:$0xff] %v762_v51   ;;  %v529_v56 = vadd.f32 %v834_v36, %v528_v52  ;;  %v566_v57 = vadd.f32 %v565_v50, %v551_v53 }
 0x108   : > { %794 = vst [vmem:[%s975_s14 + $0x30] sm:$0xff] %v782_v54  }
 0x109   : > { %v567_v59 = vadd.f32 %v566_v57, %v552_v55  ;;  %v530_v60 = vadd.f32 %v835_v44, %v529_v56 }
 0x10b   : > { %v531_v62 = vadd.f32 %v530_v60, %v413_v19  ;;  %v568_v63 = vadd.f32 %v567_v59, %v553_v58  ;;  %v561_v19 = vmul.f32 %v843_v45, %v843_v45 }
 0x10d   : > { %v569_v0 = vadd.f32 %v568_v63, %v554_v61  ;;  %v532_v1 = vadd.f32 %v531_v62, %v416_v26 }
 0x10f   : > { %v533_v4 = vadd.f32 %v838_v17, %v532_v1  ;;  %v570_v5 = vadd.f32 %v569_v0, %v555_v2 }
 0x111   : > { %v571_v7 = vadd.f32 %v570_v5, %v556_v3  ;;  %v534_v8 = vadd.f32 %v839_v21, %v533_v4 }
 0x113   : > { %v535_v10 = vadd.f32 %v534_v8, %v429_v40  ;;  %v572_v11 = vadd.f32 %v571_v7, %v557_v6 }
 0x115   : > { %v573_v12 = vadd.f32 %v572_v11, %v558_v9  ;;  %v536_v13 = vadd.f32 %v535_v10, %v432_v49 }
 0x117   : > { %v537_v16 = vadd.f32 %v842_v38, %v536_v13  ;;  %v574_v18 = vadd.f32 %v573_v12, %v559_v14 }
 0x119   : > { %v538_v20 = vadd.f32 %v843_v45, %v537_v16  ;;  %v575_v22 = vadd.f32 %v574_v18, %v560_v15 }
 0x11b   : > { %v539_v23 = vrot.slane %v538_v20, 4  ;;  %v576_v17 = vadd.f32 %v575_v22, %v561_v19 }
 0x11d   : > { %v540_v24 = vadd.f32 %v539_v23, %v538_v20  ;;  %v577_v25 = vrot.slane %v576_v17, 4 }
 0x11f   : > { %v541_v26 = vrot.slane %v540_v24, 2  ;;  %v578_v21 = vadd.f32 %v577_v25, %v576_v17 }
 0x121   : > { %v542_v27 = vadd.f32 %v541_v26, %v540_v24  ;;  %v579_v28 = vrot.slane %v578_v21, 2 }
 0x123   : > { %v543_v29 = vrot.slane %v542_v27, 1  ;;  %v580_v30 = vadd.f32 %v579_v28, %v578_v21 }
 0x125   : > { %v544_v31 = vadd.f32 %v543_v29, %v542_v27  ;;  %v581_v32 = vrot.slane %v580_v30, 1 }
 0x127   : > { %545 = vst [vmem:[%s214_s19] sm:$0x1] %v544_v31  ;;  %v582_v33 = vadd.f32 %v581_v32, %v580_v30 }
 0x129   : > { %583 = vst [vmem:[%s217_s22] sm:$0x1] %v582_v33 }
 0x12a PF: > { %s15_s15 = sadd.s32 1, %s890_s15  }
 0x12b   : > { %p12_p5 = scmp.ge.s32.totalorder %s15_s15, 4  }
 0x12d   :  { %14 = sbr.rel (!%p12_p5) target bundleno = 1 (0x1), region = 82 }

// kernel: _forward.14
= control target key start
LH: loop header
LB: loop body
LE: loop exit
PB: predicated region body
PF: predicated region fallthrough
CT: control target
= control target key end

     0   :  { %s571_s12 = smov 0   ;;  %s657_s0 = inlined_call_operand.vmem [shape: bf16[256,128], index: 0, kind: input, shape index: {}]   ;;  %s658_s1 = inlined_call_operand.vmem [shape: f32[1,128], index: 1, kind: input, shape index: {}]   ;;  %s659_s2 = inlined_call_operand.vmem [shape: f32[1,128], index: 2, kind: input, shape index: {}]   ;;  %s660_s3 = inlined_call_operand.vmem [shape: bf16[256,128], index: 3, kind: output, shape index: {}]  }
   0x1 LB: > { %s404_s13 = sadd.s32 4294967295, %s549_s12   ;;  %p408_p0 = scmp.ge.s32.totalorder %s549_s12, 1  ;;  %s549_s12 = sphi %s571_s12, %s13_s12  }
   0x2   : > { %p138_p1 = scmp.lt.s32.totalorder %s549_s12, 3 }
   0x4   : > { %p139_p2 = pnand %p408_p0, %p138_p1 }
   0x5   : > { %s409_s14 = sshll.u32 (!%p139_p2), %s404_s13, 4  ;;  %v592_v0 = vld [vmem:[%s658_s1] ss:$0 sm:$0xff] (!%p139_p2) }
   0x6   : > { %142 = sbr.rel (%p139_p2) target bundleno = 39 (0x27), region = 32  ;;  %p163_p3 = scmp.lt.s32.totalorder (!%p139_p2), %s409_s14, 31  ;;  %v601_v9 = vld [vmem:[%s659_s2] ss:$0 sm:$0xff] (!%p139_p2) }
   0xd   : > { %s662_s14 = smov (!%p163_p3, %s409_s14), 31 }
   0xe   : > { %s410_s15 = sshll.u32 %s662_s14, 2 }
   0xf   : > { %s587_s18 = scalar_lea.vmem %s657_s0, %s410_s15  ;;  %s626_s25 = scalar_lea.vmem %s660_s3, %s410_s15 }
  0x10   : > { %v450_v1 = vld [vmem:[%s587_s18] sm:$0xff]   ;;  %v521_v2 = vld [vmem:[%s587_s18 + $0x8] sm:$0xff]   ;;  %v522_v3 = vld [vmem:[%s587_s18 + $0x10] sm:$0xff]  }
  0x11   : > { %v451_v4 = vunpack.c.l.bf16 %v450_v1  ;;  %v452_v5 = vunpack.c.h.bf16 %v450_v1  ;;  %v455_v6 = vunpack.c.l.bf16 %v521_v2  ;;  %v456_v7 = vunpack.c.h.bf16 %v521_v2  ;;  %v523_v8 = vld [vmem:[%s587_s18 + $0x18] sm:$0xff]   ;;  %v524_v30 = vld [vmem:[%s587_s18 + $0x20] sm:$0xff]   ;;  %v525_v35 = vld [vmem:[%s587_s18 + $0x28] sm:$0xff]  }
  0x12   : > { %v459_v10 = vunpack.c.l.bf16 %v522_v3  ;;  %v460_v11 = vunpack.c.h.bf16 %v522_v3  ;;  %v463_v12 = vunpack.c.l.bf16 %v523_v8  ;;  %v464_v13 = vunpack.c.h.bf16 %v523_v8  ;;  %v526_v40 = vld [vmem:[%s587_s18 + $0x30] sm:$0xff]   ;;  %v527_v45 = vld [vmem:[%s587_s18 + $0x38] sm:$0xff]  }
  0x13   : > { %v213_v14 = vmul.f32 %v451_v4, %v592_v0  ;;  %v214_v15 = vmul.f32 %v452_v5, %v592_v0  ;;  %v215_v16 = vmul.f32 %v455_v6, %v592_v0  ;;  %v216_v17 = vmul.f32 %v456_v7, %v592_v0 }
  0x14   : > { %v217_v18 = vmul.f32 %v459_v10, %v592_v0  ;;  %v218_v19 = vmul.f32 %v460_v11, %v592_v0  ;;  %v219_v20 = vmul.f32 %v463_v12, %v592_v0  ;;  %v220_v21 = vmul.f32 %v464_v13, %v592_v0 }
  0x15   : > { %v236_v22 = vadd.f32 %v601_v9, %v213_v14  ;;  %v237_v23 = vadd.f32 %v601_v9, %v214_v15  ;;  %v238_v24 = vadd.f32 %v601_v9, %v215_v16  ;;  %v239_v25 = vadd.f32 %v601_v9, %v216_v17 }
  0x16   : > { %v240_v26 = vadd.f32 %v601_v9, %v217_v18  ;;  %v241_v27 = vadd.f32 %v601_v9, %v218_v19  ;;  %v242_v28 = vadd.f32 %v601_v9, %v219_v20  ;;  %v243_v29 = vadd.f32 %v601_v9, %v220_v21 }
  0x17   : > { %v252_v31 = vmax.f32 %v236_v22, 0.0  ;;  %v253_v32 = vmax.f32 %v237_v23, 0.0  ;;  %v254_v33 = vmax.f32 %v238_v24, 0.0  ;;  %v255_v34 = vmax.f32 %v239_v25, 0.0 }
  0x18   : > { %v256_v36 = vmax.f32 %v240_v26, 0.0  ;;  %v257_v37 = vmax.f32 %v241_v27, 0.0  ;;  %v258_v38 = vmax.f32 %v242_v28, 0.0  ;;  %v259_v39 = vmax.f32 %v243_v29, 0.0 }
  0x19   : > { %v484_v41 = vpack.c.bf16 %v253_v32, %v252_v31  ;;  %v489_v42 = vpack.c.bf16 %v255_v34, %v254_v33  ;;  %v467_v43 = vunpack.c.l.bf16 %v524_v30  ;;  %v468_v44 = vunpack.c.h.bf16 %v524_v30 }
  0x1a   : > { %v494_v46 = vpack.c.bf16 %v257_v37, %v256_v36  ;;  %v499_v47 = vpack.c.bf16 %v259_v39, %v258_v38  ;;  %v471_v48 = vunpack.c.l.bf16 %v525_v35  ;;  %v472_v49 = vunpack.c.h.bf16 %v525_v35 }
  0x1b   : > { %485 = vst [vmem:[%s626_s25] sm:$0xff] %v484_v41   ;;  %528 = vst [vmem:[%s626_s25 + $0x8] sm:$0xff] %v489_v42   ;;  %v221_v50 = vmul.f32 %v467_v43, %v592_v0  ;;  %v222_v51 = vmul.f32 %v468_v44, %v592_v0  ;;  %v475_v52 = vunpack.c.l.bf16 %v526_v40  ;;  %v476_v53 = vunpack.c.h.bf16 %v526_v40 }
  0x1c   : > { %529 = vst [vmem:[%s626_s25 + $0x10] sm:$0xff] %v494_v46   ;;  %530 = vst [vmem:[%s626_s25 + $0x18] sm:$0xff] %v499_v47   ;;  %v223_v54 = vmul.f32 %v471_v48, %v592_v0  ;;  %v224_v55 = vmul.f32 %v472_v49, %v592_v0  ;;  %v479_v56 = vunpack.c.l.bf16 %v527_v45  ;;  %v480_v57 = vunpack.c.h.bf16 %v527_v45 }
  0x1d   : > { %v244_v58 = vadd.f32 %v601_v9, %v221_v50  ;;  %v245_v59 = vadd.f32 %v601_v9, %v222_v51  ;;  %v225_v60 = vmul.f32 %v475_v52, %v592_v0  ;;  %v226_v61 = vmul.f32 %v476_v53, %v592_v0 }
  0x1e   : > { %v246_v62 = vadd.f32 %v601_v9, %v223_v54  ;;  %v247_v63 = vadd.f32 %v601_v9, %v224_v55  ;;  %v227_v1 = vmul.f32 %v479_v56, %v592_v0  ;;  %v228_v2 = vmul.f32 %v480_v57, %v592_v0 }
  0x1f   : > { %v260_v3 = vmax.f32 %v244_v58, 0.0  ;;  %v261_v4 = vmax.f32 %v245_v59, 0.0  ;;  %v248_v5 = vadd.f32 %v601_v9, %v225_v60  ;;  %v249_v6 = vadd.f32 %v601_v9, %v226_v61 }
  0x20   : > { %v262_v7 = vmax.f32 %v246_v62, 0.0  ;;  %v263_v8 = vmax.f32 %v247_v63, 0.0  ;;  %v250_v10 = vadd.f32 %v601_v9, %v227_v1  ;;  %v251_v11 = vadd.f32 %v601_v9, %v228_v2 }
  0x21   : > { %v504_v12 = vpack.c.bf16 %v261_v4, %v260_v3  ;;  %v264_v13 = vmax.f32 %v248_v5, 0.0  ;;  %v265_v14 = vmax.f32 %v249_v6, 0.0 }
  0x22   : > { %v509_v15 = vpack.c.bf16 %v263_v8, %v262_v7  ;;  %v266_v0 = vmax.f32 %v250_v10, 0.0  ;;  %v267_v16 = vmax.f32 %v251_v11, 0.0 }
  0x23   : > { %531 = vst [vmem:[%s626_s25 + $0x20] sm:$0xff] %v504_v12   ;;  %v514_v17 = vpack.c.bf16 %v265_v14, %v264_v13 }
  0x24   : > { %532 = vst [vmem:[%s626_s25 + $0x28] sm:$0xff] %v509_v15   ;;  %v519_v18 = vpack.c.bf16 %v267_v16, %v266_v0 }
  0x25   : > { %533 = vst [vmem:[%s626_s25 + $0x30] sm:$0xff] %v514_v17  }
  0x26   : > { %534 = vst [vmem:[%s626_s25 + $0x38] sm:$0xff] %v519_v18  }
  0x27 PF: > { %s13_s12 = sadd.s32 1, %s549_s12  }
  0x28   : > { %p10_p4 = scmp.ge.s32.totalorder %s13_s12, 4  }
  0x2a   :  { %12 = sbr.rel (!%p10_p4) target bundleno = 1 (0x1), region = 62 }

// kernel: _forward.15
= control target key start
LH: loop header
LB: loop body
LE: loop exit
PB: predicated region body
PF: predicated region fallthrough
CT: control target
= control target key end

     0   :  { %s917_s15 = smov 0   ;;  %s996_s0 = inlined_call_operand.vmem [shape: bf16[640,128], index: 0, kind: input, shape index: {}]   ;;  %s997_s1 = inlined_call_operand.vmem [shape: bf16[128,128], index: 1, kind: input, shape index: {}]   ;;  %s998_s2 = inlined_call_operand.vmem [shape: bf16[640,128], index: 2, kind: output, shape index: {0}]   ;;  %s999_s3 = inlined_call_operand.vmem [shape: f32[5,1,128], index: 3, kind: output, shape index: {1}]   ;;  %s1000_s4 = inlined_call_operand.vmem [shape: f32[5,1,128], index: 4, kind: output, shape index: {2}]  }
   0x1 LB: > { %s923_s16 = sadd.s32 4294967295, %s890_s15   ;;  %p694_p0 = scmp.ge.s32.totalorder %s890_s15, 1  ;;  %s890_s15 = sphi %s917_s15, %s15_s15  }
   0x2   : > { %p168_p1 = scmp.lt.s32.totalorder %s890_s15, 6 }
   0x4   : > { %p169_p2 = pnand %p694_p0, %p168_p1 }
   0x5   : > { %v868_v0 = vld [vmem:[%s997_s1] sm:$0xff] (!%p169_p2)   ;;  %s695_s19 = sshll.u32 (!%p169_p2), %s923_s16, 4  ;;  %v869_v1 = vld [vmem:[%s997_s1 + $0x8] sm:$0xff] (!%p169_p2)   ;;  %v870_v2 = vld [vmem:[%s997_s1 + $0x10] sm:$0xff] (!%p169_p2)   ;;  %p212_p4 = scmp.lt.s32.totalorder (!%p169_p2), %s923_s16, 4 }
   0x6   : > { %172 = sbr.rel (%p169_p2) target bundleno = 298 (0x12a), region = 28  ;;  %p201_p3 = scmp.lt.s32.totalorder (!%p169_p2), %s695_s19, 79  ;;  %812 = vmatprep.subr.bf16.mxu0 (!%p169_p2), %v868_v0  ;;  %844 = vmatprep.subr.bf16.mxu1 (!%p169_p2), %v868_v0  ;;  %v871_v3 = vld [vmem:[%s997_s1 + $0x18] sm:$0xff] (!%p169_p2)   ;;  %v872_v5 = vld [vmem:[%s997_s1 + $0x20] sm:$0xff] (!%p169_p2)   ;;  %v873_v7 = vld [vmem:[%s997_s1 + $0x28] sm:$0xff] (!%p169_p2)  }
   0x7   : > { %813 = vmatpush3.bf16.msra.mxu0 (!%p169_p2), %v868_v0  ;;  %852 = vmatpush3.bf16.msra.mxu1 (!%p169_p2), %v868_v0  ;;  %v874_v8 = vld [vmem:[%s997_s1 + $0x30] sm:$0xff] (!%p169_p2)   ;;  %v875_v9 = vld [vmem:[%s997_s1 + $0x38] sm:$0xff] (!%p169_p2)  }
   0x8   : > { %814 = vmatprep.subr.bf16.mxu0 (!%p169_p2), %v869_v1  ;;  %845 = vmatprep.subr.bf16.mxu1 (!%p169_p2), %v869_v1 }
   0xb   : > { %815 = vmatpush3.bf16.msra.mxu0 (!%p169_p2), %v869_v1  ;;  %853 = vmatpush3.bf16.msra.mxu1 (!%p169_p2), %v869_v1 }
   0xc   : > { %816 = vmatprep.subr.bf16.mxu0 (!%p169_p2), %v870_v2  ;;  %846 = vmatprep.subr.bf16.mxu1 (!%p169_p2), %v870_v2 }
   0xd   : > { %s1002_s19 = smov (!%p201_p3, %s695_s19), 79  ;;  %s1004_s16 = smov (!%p212_p4, %s923_s16), 4 }
   0xe   : > { %s696_s24 = sshll.u32 %s1002_s19, 2  ;;  %s214_s19 = scalar_lea.vmem %s999_s3, %s1004_s16 }
   0xf   : > { %s945_s27 = scalar_lea.vmem %s996_s0, %s696_s24  ;;  %817 = vmatpush3.bf16.msra.mxu0 %v870_v2  ;;  %854 = vmatpush3.bf16.msra.mxu1 %v870_v2  ;;  %s975_s14 = scalar_lea.vmem %s998_s2, %s696_s24 }
  0x10   : > { %v876_v4 = vld [vmem:[%s945_s27] sm:$0xff]   ;;  %818 = vmatprep.subr.bf16.mxu0 %v871_v3  ;;  %847 = vmatprep.subr.bf16.mxu1 %v871_v3  ;;  %v877_v10 = vld [vmem:[%s945_s27 + $0x8] sm:$0xff]   ;;  %v878_v12 = vld [vmem:[%s945_s27 + $0x10] sm:$0xff]   ;;  %s217_s22 = scalar_lea.vmem %s1000_s4, %s1004_s16 }
  0x11   : > { %828 = vmatprep.mubr.bf16.mxu0 %v876_v4  ;;  %v880_v6 = vld [vmem:[%s945_s27 + $0x20] sm:$0xff]   ;;  %v881_v11 = vld [vmem:[%s945_s27 + $0x28] sm:$0xff]   ;;  %v882_v13 = vld [vmem:[%s945_s27 + $0x30] sm:$0xff]  }
  0x12   : > { %836 = vmatprep.mubr.bf16.mxu1 %v880_v6  ;;  %v879_v14 = vld [vmem:[%s945_s27 + $0x18] sm:$0xff]  }
  0x13   : > { %819 = vmatpush3.bf16.msra.mxu0 %v871_v3  ;;  %855 = vmatpush3.bf16.msra.mxu1 %v871_v3  ;;  %v883_v15 = vld [vmem:[%s945_s27 + $0x38] sm:$0xff]  }
  0x14   : > { %820 = vmatprep.subr.bf16.mxu0 %v872_v5  ;;  %848 = vmatprep.subr.bf16.mxu1 %v872_v5 }
  0x17   : > { %821 = vmatpush3.bf16.msra.mxu0 %v872_v5  ;;  %856 = vmatpush3.bf16.msra.mxu1 %v872_v5 }
  0x18   : > { %822 = vmatprep.subr.bf16.mxu0 %v873_v7  ;;  %849 = vmatprep.subr.bf16.mxu1 %v873_v7 }
  0x1b   : > { %823 = vmatpush3.bf16.msra.mxu0 %v873_v7  ;;  %857 = vmatpush3.bf16.msra.mxu1 %v873_v7 }
  0x1c   : > { %824 = vmatprep.subr.bf16.mxu0 %v874_v8  ;;  %850 = vmatprep.subr.bf16.mxu1 %v874_v8 }
  0x1f   : > { %825 = vmatpush3.bf16.msra.mxu0 %v874_v8  ;;  %858 = vmatpush3.bf16.msra.mxu1 %v874_v8 }
  0x20   : > { %826 = vmatprep.subr.bf16.mxu0 %v875_v9  ;;  %851 = vmatprep.subr.bf16.mxu1 %v875_v9 }
  0x23   : > { %827 = vmatpush3.bf16.msra.mxu0 %v875_v9  ;;  %859 = vmatpush3.bf16.msra.mxu1 %v875_v9 }
  0x26   : > { %829 = vmatmul.mubr.bf16.vlgmr.msra.gmra.mrb[0].mxu0 %v877_v10  ;;  %837 = vmatmul.mubr.bf16.vlgmr.msra.gmra.mrb[0].mxu1 %v881_v11 }
  0x27   : > { %832 = vmatprep.mubr.bf16.mxu0 %v878_v12  ;;  %840 = vmatprep.mubr.bf16.mxu1 %v882_v13 }
  0x2e   : > { %833 = vmatmul.mubr.bf16.gmra.mrb[4].mxu0 %v879_v14  ;;  %841 = vmatmul.mubr.bf16.gmra.mrb[4].mxu1 %v883_v15 }
  0xf9   : > { %v830_v16 = vpop.f32.mrb[0].mxu0  ;;  %v838_v17 = vpop.f32.mrb[0].mxu1 }
  0xfa   : > { %v381_v18 = vpop.f32.mrb[1].mxu0  ;;  %v413_v19 = vpop.f32.mrb[1].mxu1  ;;  %v548_v31 = vmul.f32 %v830_v16, %v830_v16  ;;  %v556_v3 = vmul.f32 %v838_v17, %v838_v17 }
  0xfb   : > { %v831_v20 = vpop.f32.mrb[2].mxu0  ;;  %v839_v21 = vpop.f32.mrb[2].mxu1  ;;  %v546_v22 = vmul.f32 %v381_v18, %v381_v18  ;;  %v554_v61 = vmul.f32 %v413_v19, %v413_v19 }
  0xfc   : > { %v757_v23 = vpack.c.bf16 %v831_v20, %v830_v16  ;;  %v384_v24 = vpop.f32.mrb[3].mxu0  ;;  %v777_v25 = vpack.c.bf16 %v839_v21, %v838_v17  ;;  %v416_v26 = vpop.f32.mrb[3].mxu1  ;;  %v549_v34 = vmul.f32 %v831_v20, %v831_v20  ;;  %v557_v6 = vmul.f32 %v839_v21, %v839_v21 }
  0xfd   : > { %v752_v27 = vpack.c.bf16 %v384_v24, %v381_v18  ;;  %v524_v28 = vadd.f32 %v384_v24, %v381_v18  ;;  %v547_v29 = vmul.f32 %v384_v24, %v384_v24  ;;  %v772_v30 = vpack.c.bf16 %v416_v26, %v413_v19 }
  0xfe   : > { %789 = vst [vmem:[%s975_s14 + $0x8] sm:$0xff] %v757_v23   ;;  %793 = vst [vmem:[%s975_s14 + $0x28] sm:$0xff] %v777_v25   ;;  %v555_v2 = vmul.f32 %v416_v26, %v416_v26 }
  0xff   : > { %753 = vst [vmem:[%s975_s14] sm:$0xff] %v752_v27   ;;  %v525_v32 = vadd.f32 %v830_v16, %v524_v28  ;;  %v562_v33 = vadd.f32 %v547_v29, %v546_v22  ;;  %792 = vst [vmem:[%s975_s14 + $0x20] sm:$0xff] %v772_v30  }
 0x101   : > { %v563_v35 = vadd.f32 %v562_v33, %v548_v31  ;;  %v834_v36 = vpop.f32.mrb[4].mxu0  ;;  %v526_v37 = vadd.f32 %v831_v20, %v525_v32  ;;  %v842_v38 = vpop.f32.mrb[4].mxu1 }
 0x102   : > { %v397_v39 = vpop.f32.mrb[5].mxu0  ;;  %v429_v40 = vpop.f32.mrb[5].mxu1  ;;  %v552_v55 = vmul.f32 %v834_v36, %v834_v36  ;;  %v560_v15 = vmul.f32 %v842_v38, %v842_v38 }
 0x103   : > { %v527_v41 = vadd.f32 %v526_v37, %v397_v39  ;;  %v550_v42 = vmul.f32 %v397_v39, %v397_v39  ;;  %v564_v43 = vadd.f32 %v563_v35, %v549_v34  ;;  %v835_v44 = vpop.f32.mrb[6].mxu0  ;;  %v843_v45 = vpop.f32.mrb[6].mxu1  ;;  %v558_v9 = vmul.f32 %v429_v40, %v429_v40 }
 0x104   : > { %v767_v46 = vpack.c.bf16 %v835_v44, %v834_v36  ;;  %v400_v47 = vpop.f32.mrb[7].mxu0  ;;  %v787_v48 = vpack.c.bf16 %v843_v45, %v842_v38  ;;  %v432_v49 = vpop.f32.mrb[7].mxu1  ;;  %v553_v58 = vmul.f32 %v835_v44, %v835_v44 }
 0x105   : > { %v565_v50 = vadd.f32 %v564_v43, %v550_v42  ;;  %v762_v51 = vpack.c.bf16 %v400_v47, %v397_v39  ;;  %v528_v52 = vadd.f32 %v527_v41, %v400_v47  ;;  %v551_v53 = vmul.f32 %v400_v47, %v400_v47 }
 0x106   : > { %791 = vst [vmem:[%s975_s14 + $0x18] sm:$0xff] %v767_v46   ;;  %795 = vst [vmem:[%s975_s14 + $0x38] sm:$0xff] %v787_v48   ;;  %v782_v54 = vpack.c.bf16 %v432_v49, %v429_v40  ;;  %v559_v14 = vmul.f32 %v432_v49, %v432_v49 }
 0x107   : > { %790 = vst [vmem:[%s975_s14 + $0x10] sm:$0xff] %v762_v51   ;;  %v529_v56 = vadd.f32 %v834_v36, %v528_v52  ;;  %v566_v57 = vadd.f32 %v565_v50, %v551_v53 }
 0x108   : > { %794 = vst [vmem:[%s975_s14 + $0x30] sm:$0xff] %v782_v54  }
 0x109   : > { %v567_v59 = vadd.f32 %v566_v57, %v552_v55  ;;  %v530_v60 = vadd.f32 %v835_v44, %v529_v56 }
 0x10b   : > { %v531_v62 = vadd.f32 %v530_v60, %v413_v19  ;;  %v568_v63 = vadd.f32 %v567_v59, %v553_v58  ;;  %v561_v19 = vmul.f32 %v843_v45, %v843_v45 }
 0x10d   : > { %v569_v0 = vadd.f32 %v568_v63, %v554_v61  ;;  %v532_v1 = vadd.f32 %v531_v62, %v416_v26 }
 0x10f   : > { %v533_v4 = vadd.f32 %v838_v17, %v532_v1  ;;  %v570_v5 = vadd.f32 %v569_v0, %v555_v2 }
 0x111   : > { %v571_v7 = vadd.f32 %v570_v5, %v556_v3  ;;  %v534_v8 = vadd.f32 %v839_v21, %v533_v4 }
 0x113   : > { %v535_v10 = vadd.f32 %v534_v8, %v429_v40  ;;  %v572_v11 = vadd.f32 %v571_v7, %v557_v6 }
 0x115   : > { %v573_v12 = vadd.f32 %v572_v11, %v558_v9  ;;  %v536_v13 = vadd.f32 %v535_v10, %v432_v49 }
 0x117   : > { %v537_v16 = vadd.f32 %v842_v38, %v536_v13  ;;  %v574_v18 = vadd.f32 %v573_v12, %v559_v14 }
 0x119   : > { %v538_v20 = vadd.f32 %v843_v45, %v537_v16  ;;  %v575_v22 = vadd.f32 %v574_v18, %v560_v15 }
 0x11b   : > { %v539_v23 = vrot.slane %v538_v20, 4  ;;  %v576_v17 = vadd.f32 %v575_v22, %v561_v19 }
 0x11d   : > { %v540_v24 = vadd.f32 %v539_v23, %v538_v20  ;;  %v577_v25 = vrot.slane %v576_v17, 4 }
 0x11f   : > { %v541_v26 = vrot.slane %v540_v24, 2  ;;  %v578_v21 = vadd.f32 %v577_v25, %v576_v17 }
 0x121   : > { %v542_v27 = vadd.f32 %v541_v26, %v540_v24  ;;  %v579_v28 = vrot.slane %v578_v21, 2 }
 0x123   : > { %v543_v29 = vrot.slane %v542_v27, 1  ;;  %v580_v30 = vadd.f32 %v579_v28, %v578_v21 }
 0x125   : > { %v544_v31 = vadd.f32 %v543_v29, %v542_v27  ;;  %v581_v32 = vrot.slane %v580_v30, 1 }
 0x127   : > { %545 = vst [vmem:[%s214_s19] sm:$0x1] %v544_v31  ;;  %v582_v33 = vadd.f32 %v581_v32, %v580_v30 }
 0x129   : > { %583 = vst [vmem:[%s217_s22] sm:$0x1] %v582_v33 }
 0x12a PF: > { %s15_s15 = sadd.s32 1, %s890_s15  }
 0x12b   : > { %p12_p5 = scmp.ge.s32.totalorder %s15_s15, 7  }
 0x12d   :  { %14 = sbr.rel (!%p12_p5) target bundleno = 1 (0x1), region = 82 }

// kernel: _forward.16
= control target key start
LH: loop header
LB: loop body
LE: loop exit
PB: predicated region body
PF: predicated region fallthrough
CT: control target
= control target key end

     0   :  { %s571_s12 = smov 0   ;;  %s657_s0 = inlined_call_operand.vmem [shape: bf16[640,128], index: 0, kind: input, shape index: {}]   ;;  %s658_s1 = inlined_call_operand.vmem [shape: f32[1,128], index: 1, kind: input, shape index: {}]   ;;  %s659_s2 = inlined_call_operand.vmem [shape: f32[1,128], index: 2, kind: input, shape index: {}]   ;;  %s660_s3 = inlined_call_operand.vmem [shape: bf16[640,128], index: 3, kind: output, shape index: {}]  }
   0x1 LB: > { %s404_s13 = sadd.s32 4294967295, %s549_s12   ;;  %p408_p0 = scmp.ge.s32.totalorder %s549_s12, 1  ;;  %s549_s12 = sphi %s571_s12, %s13_s12  }
   0x2   : > { %p138_p1 = scmp.lt.s32.totalorder %s549_s12, 6 }
   0x4   : > { %p139_p2 = pnand %p408_p0, %p138_p1 }
   0x5   : > { %s409_s14 = sshll.u32 (!%p139_p2), %s404_s13, 4  ;;  %v592_v0 = vld [vmem:[%s658_s1] ss:$0 sm:$0xff] (!%p139_p2) }
   0x6   : > { %142 = sbr.rel (%p139_p2) target bundleno = 39 (0x27), region = 32  ;;  %p163_p3 = scmp.lt.s32.totalorder (!%p139_p2), %s409_s14, 79  ;;  %v601_v9 = vld [vmem:[%s659_s2] ss:$0 sm:$0xff] (!%p139_p2) }
   0xd   : > { %s662_s14 = smov (!%p163_p3, %s409_s14), 79 }
   0xe   : > { %s410_s15 = sshll.u32 %s662_s14, 2 }
   0xf   : > { %s587_s18 = scalar_lea.vmem %s657_s0, %s410_s15  ;;  %s626_s25 = scalar_lea.vmem %s660_s3, %s410_s15 }
  0x10   : > { %v450_v1 = vld [vmem:[%s587_s18] sm:$0xff]   ;;  %v521_v2 = vld [vmem:[%s587_s18 + $0x8] sm:$0xff]   ;;  %v522_v3 = vld [vmem:[%s587_s18 + $0x10] sm:$0xff]  }
  0x11   : > { %v451_v4 = vunpack.c.l.bf16 %v450_v1  ;;  %v452_v5 = vunpack.c.h.bf16 %v450_v1  ;;  %v455_v6 = vunpack.c.l.bf16 %v521_v2  ;;  %v456_v7 = vunpack.c.h.bf16 %v521_v2  ;;  %v523_v8 = vld [vmem:[%s587_s18 + $0x18] sm:$0xff]   ;;  %v524_v30 = vld [vmem:[%s587_s18 + $0x20] sm:$0xff]   ;;  %v525_v35 = vld [vmem:[%s587_s18 + $0x28] sm:$0xff]  }
  0x12   : > { %v459_v10 = vunpack.c.l.bf16 %v522_v3  ;;  %v460_v11 = vunpack.c.h.bf16 %v522_v3  ;;  %v463_v12 = vunpack.c.l.bf16 %v523_v8  ;;  %v464_v13 = vunpack.c.h.bf16 %v523_v8  ;;  %v526_v40 = vld [vmem:[%s587_s18 + $0x30] sm:$0xff]   ;;  %v527_v45 = vld [vmem:[%s587_s18 + $0x38] sm:$0xff]  }
  0x13   : > { %v213_v14 = vmul.f32 %v451_v4, %v592_v0  ;;  %v214_v15 = vmul.f32 %v452_v5, %v592_v0  ;;  %v215_v16 = vmul.f32 %v455_v6, %v592_v0  ;;  %v216_v17 = vmul.f32 %v456_v7, %v592_v0 }
  0x14   : > { %v217_v18 = vmul.f32 %v459_v10, %v592_v0  ;;  %v218_v19 = vmul.f32 %v460_v11, %v592_v0  ;;  %v219_v20 = vmul.f32 %v463_v12, %v592_v0  ;;  %v220_v21 = vmul.f32 %v464_v13, %v592_v0 }
  0x15   : > { %v236_v22 = vadd.f32 %v601_v9, %v213_v14  ;;  %v237_v23 = vadd.f32 %v601_v9, %v214_v15  ;;  %v238_v24 = vadd.f32 %v601_v9, %v215_v16  ;;  %v239_v25 = vadd.f32 %v601_v9, %v216_v17 }
  0x16   : > { %v240_v26 = vadd.f32 %v601_v9, %v217_v18  ;;  %v241_v27 = vadd.f32 %v601_v9, %v218_v19  ;;  %v242_v28 = vadd.f32 %v601_v9, %v219_v20  ;;  %v243_v29 = vadd.f32 %v601_v9, %v220_v21 }
  0x17   : > { %v252_v31 = vmax.f32 %v236_v22, 0.0  ;;  %v253_v32 = vmax.f32 %v237_v23, 0.0  ;;  %v254_v33 = vmax.f32 %v238_v24, 0.0  ;;  %v255_v34 = vmax.f32 %v239_v25, 0.0 }
  0x18   : > { %v256_v36 = vmax.f32 %v240_v26, 0.0  ;;  %v257_v37 = vmax.f32 %v241_v27, 0.0  ;;  %v258_v38 = vmax.f32 %v242_v28, 0.0  ;;  %v259_v39 = vmax.f32 %v243_v29, 0.0 }
  0x19   : > { %v484_v41 = vpack.c.bf16 %v253_v32, %v252_v31  ;;  %v489_v42 = vpack.c.bf16 %v255_v34, %v254_v33  ;;  %v467_v43 = vunpack.c.l.bf16 %v524_v30  ;;  %v468_v44 = vunpack.c.h.bf16 %v524_v30 }
  0x1a   : > { %v494_v46 = vpack.c.bf16 %v257_v37, %v256_v36  ;;  %v499_v47 = vpack.c.bf16 %v259_v39, %v258_v38  ;;  %v471_v48 = vunpack.c.l.bf16 %v525_v35  ;;  %v472_v49 = vunpack.c.h.bf16 %v525_v35 }
  0x1b   : > { %485 = vst [vmem:[%s626_s25] sm:$0xff] %v484_v41   ;;  %528 = vst [vmem:[%s626_s25 + $0x8] sm:$0xff] %v489_v42   ;;  %v221_v50 = vmul.f32 %v467_v43, %v592_v0  ;;  %v222_v51 = vmul.f32 %v468_v44, %v592_v0  ;;  %v475_v52 = vunpack.c.l.bf16 %v526_v40  ;;  %v476_v53 = vunpack.c.h.bf16 %v526_v40 }
  0x1c   : > { %529 = vst [vmem:[%s626_s25 + $0x10] sm:$0xff] %v494_v46   ;;  %530 = vst [vmem:[%s626_s25 + $0x18] sm:$0xff] %v499_v47   ;;  %v223_v54 = vmul.f32 %v471_v48, %v592_v0  ;;  %v224_v55 = vmul.f32 %v472_v49, %v592_v0  ;;  %v479_v56 = vunpack.c.l.bf16 %v527_v45  ;;  %v480_v57 = vunpack.c.h.bf16 %v527_v45 }
  0x1d   : > { %v244_v58 = vadd.f32 %v601_v9, %v221_v50  ;;  %v245_v59 = vadd.f32 %v601_v9, %v222_v51  ;;  %v225_v60 = vmul.f32 %v475_v52, %v592_v0  ;;  %v226_v61 = vmul.f32 %v476_v53, %v592_v0 }
  0x1e   : > { %v246_v62 = vadd.f32 %v601_v9, %v223_v54  ;;  %v247_v63 = vadd.f32 %v601_v9, %v224_v55  ;;  %v227_v1 = vmul.f32 %v479_v56, %v592_v0  ;;  %v228_v2 = vmul.f32 %v480_v57, %v592_v0 }
  0x1f   : > { %v260_v3 = vmax.f32 %v244_v58, 0.0  ;;  %v261_v4 = vmax.f32 %v245_v59, 0.0  ;;  %v248_v5 = vadd.f32 %v601_v9, %v225_v60  ;;  %v249_v6 = vadd.f32 %v601_v9, %v226_v61 }
  0x20   : > { %v262_v7 = vmax.f32 %v246_v62, 0.0  ;;  %v263_v8 = vmax.f32 %v247_v63, 0.0  ;;  %v250_v10 = vadd.f32 %v601_v9, %v227_v1  ;;  %v251_v11 = vadd.f32 %v601_v9, %v228_v2 }
  0x21   : > { %v504_v12 = vpack.c.bf16 %v261_v4, %v260_v3  ;;  %v264_v13 = vmax.f32 %v248_v5, 0.0  ;;  %v265_v14 = vmax.f32 %v249_v6, 0.0 }
  0x22   : > { %v509_v15 = vpack.c.bf16 %v263_v8, %v262_v7  ;;  %v266_v0 = vmax.f32 %v250_v10, 0.0  ;;  %v267_v16 = vmax.f32 %v251_v11, 0.0 }
  0x23   : > { %531 = vst [vmem:[%s626_s25 + $0x20] sm:$0xff] %v504_v12   ;;  %v514_v17 = vpack.c.bf16 %v265_v14, %v264_v13 }
  0x24   : > { %532 = vst [vmem:[%s626_s25 + $0x28] sm:$0xff] %v509_v15   ;;  %v519_v18 = vpack.c.bf16 %v267_v16, %v266_v0 }
  0x25   : > { %533 = vst [vmem:[%s626_s25 + $0x30] sm:$0xff] %v514_v17  }
  0x26   : > { %534 = vst [vmem:[%s626_s25 + $0x38] sm:$0xff] %v519_v18  }
  0x27 PF: > { %s13_s12 = sadd.s32 1, %s549_s12  }
  0x28   : > { %p10_p4 = scmp.ge.s32.totalorder %s13_s12, 7  }
  0x2a   :  { %12 = sbr.rel (!%p10_p4) target bundleno = 1 (0x1), region = 62 }

// kernel: _forward.17
= control target key start
LH: loop header
LB: loop body
LE: loop exit
PB: predicated region body
PF: predicated region fallthrough
CT: control target
= control target key end

     0   :  { %s863_s9 = smov 0   ;;  %s960_s0 = inlined_call_operand.vmem [shape: bf16[2304,128], index: 0, kind: input, shape index: {}]   ;;  %s961_s1 = inlined_call_operand.vmem [shape: bf16[128,128], index: 1, kind: input, shape index: {}]   ;;  %s962_s2 = inlined_call_operand.vmem [shape: f32[2304,128], index: 2, kind: output, shape index: {}]  }
   0x1 LB: > { %s621_s10 = sadd.s32 4294967295, %s846_s9   ;;  %p625_p0 = scmp.ge.s32.totalorder %s846_s9, 1  ;;  %s846_s9 = sphi %s863_s9, %s12_s9  }
   0x2   : > { %p113_p1 = scmp.lt.s32.totalorder %s846_s9, 10 }
   0x4   : > { %p114_p2 = pnand %p625_p0, %p113_p1 }
   0x5   : > { %v752_v0 = vld [vmem:[%s961_s1] sm:$0xff] (!%p114_p2)   ;;  %s626_s13 = sshll.u32 (!%p114_p2), %s621_s10, 5  ;;  %v753_v1 = vld [vmem:[%s961_s1 + $0x8] sm:$0xff] (!%p114_p2)   ;;  %v754_v2 = vld [vmem:[%s961_s1 + $0x10] sm:$0xff] (!%p114_p2)  }
   0x6   : > { %117 = sbr.rel (%p114_p2) target bundleno = 296 (0x128), region = 28  ;;  %p136_p3 = scmp.lt.s32.totalorder (!%p114_p2), %s626_s13, 287  ;;  %680 = vmatprep.subr.bf16.mxu0 (!%p114_p2), %v752_v0  ;;  %728 = vmatprep.subr.bf16.mxu1 (!%p114_p2), %v752_v0  ;;  %v755_v3 = vld [vmem:[%s961_s1 + $0x18] sm:$0xff] (!%p114_p2)   ;;  %v756_v6 = vld [vmem:[%s961_s1 + $0x20] sm:$0xff] (!%p114_p2)   ;;  %v757_v7 = vld [vmem:[%s961_s1 + $0x28] sm:$0xff] (!%p114_p2)  }
   0x7   : > { %681 = vmatpush3.bf16.msra.mxu0 (!%p114_p2), %v752_v0  ;;  %736 = vmatpush3.bf16.msra.mxu1 (!%p114_p2), %v752_v0  ;;  %v758_v8 = vld [vmem:[%s961_s1 + $0x30] sm:$0xff] (!%p114_p2)   ;;  %v759_v9 = vld [vmem:[%s961_s1 + $0x38] sm:$0xff] (!%p114_p2)  }
   0x8   : > { %682 = vmatprep.subr.bf16.mxu0 (!%p114_p2), %v753_v1  ;;  %729 = vmatprep.subr.bf16.mxu1 (!%p114_p2), %v753_v1 }
   0xb   : > { %683 = vmatpush3.bf16.msra.mxu0 (!%p114_p2), %v753_v1  ;;  %737 = vmatpush3.bf16.msra.mxu1 (!%p114_p2), %v753_v1 }
   0xc   : > { %684 = vmatprep.subr.bf16.mxu0 (!%p114_p2), %v754_v2  ;;  %730 = vmatprep.subr.bf16.mxu1 (!%p114_p2), %v754_v2 }
   0xd   : > { %s964_s13 = smov (!%p136_p3, %s626_s13), 287 }
   0xe   : > { %s627_s18 = sshll.u32 %s964_s13, 2  ;;  %s629_s4 = sshll.u32 %s964_s13, 3 }
   0xf   : > { %s886_s21 = scalar_lea.vmem %s960_s0, %s627_s18  ;;  %685 = vmatpush3.bf16.msra.mxu0 %v754_v2  ;;  %738 = vmatpush3.bf16.msra.mxu1 %v754_v2  ;;  %s923_s7 = scalar_lea.vmem %s962_s2, %s629_s4 }
  0x10   : > { %v760_v4 = vld [vmem:[%s886_s21] sm:$0xff]   ;;  %686 = vmatprep.subr.bf16.mxu0 %v755_v3  ;;  %731 = vmatprep.subr.bf16.mxu1 %v755_v3  ;;  %v762_v10 = vld [vmem:[%s886_s21 + $0x8] sm:$0xff]   ;;  %v764_v12 = vld [vmem:[%s886_s21 + $0x10] sm:$0xff]  }
  0x11   : > { %v761_v5 = vld [vmem:[%s886_s21 + $0x40] sm:$0xff]   ;;  %696 = vmatprep.mubr.bf16.mxu0 %v760_v4  ;;  %v763_v11 = vld [vmem:[%s886_s21 + $0x48] sm:$0xff]   ;;  %v765_v13 = vld [vmem:[%s886_s21 + $0x50] sm:$0xff]  }
  0x12   : > { %712 = vmatprep.mubr.bf16.mxu1 %v761_v5  ;;  %v766_v14 = vld [vmem:[%s886_s21 + $0x18] sm:$0xff]   ;;  %v768_v16 = vld [vmem:[%s886_s21 + $0x20] sm:$0xff]   ;;  %v770_v18 = vld [vmem:[%s886_s21 + $0x28] sm:$0xff]  }
  0x13   : > { %687 = vmatpush3.bf16.msra.mxu0 %v755_v3  ;;  %739 = vmatpush3.bf16.msra.mxu1 %v755_v3  ;;  %v767_v15 = vld [vmem:[%s886_s21 + $0x58] sm:$0xff]   ;;  %v769_v17 = vld [vmem:[%s886_s21 + $0x60] sm:$0xff]   ;;  %v771_v19 = vld [vmem:[%s886_s21 + $0x68] sm:$0xff]  }
  0x14   : > { %688 = vmatprep.subr.bf16.mxu0 %v756_v6  ;;  %732 = vmatprep.subr.bf16.mxu1 %v756_v6  ;;  %v772_v20 = vld [vmem:[%s886_s21 + $0x30] sm:$0xff]   ;;  %v774_v22 = vld [vmem:[%s886_s21 + $0x38] sm:$0xff]  }
  0x15   : > { %v773_v21 = vld [vmem:[%s886_s21 + $0x70] sm:$0xff]   ;;  %v775_v23 = vld [vmem:[%s886_s21 + $0x78] sm:$0xff]  }
  0x17   : > { %689 = vmatpush3.bf16.msra.mxu0 %v756_v6  ;;  %740 = vmatpush3.bf16.msra.mxu1 %v756_v6 }
  0x18   : > { %690 = vmatprep.subr.bf16.mxu0 %v757_v7  ;;  %733 = vmatprep.subr.bf16.mxu1 %v757_v7 }
  0x1b   : > { %691 = vmatpush3.bf16.msra.mxu0 %v757_v7  ;;  %741 = vmatpush3.bf16.msra.mxu1 %v757_v7 }
  0x1c   : > { %692 = vmatprep.subr.bf16.mxu0 %v758_v8  ;;  %734 = vmatprep.subr.bf16.mxu1 %v758_v8 }
  0x1f   : > { %693 = vmatpush3.bf16.msra.mxu0 %v758_v8  ;;  %742 = vmatpush3.bf16.msra.mxu1 %v758_v8 }
  0x20   : > { %694 = vmatprep.subr.bf16.mxu0 %v759_v9  ;;  %735 = vmatprep.subr.bf16.mxu1 %v759_v9 }
  0x23   : > { %695 = vmatpush3.bf16.msra.mxu0 %v759_v9  ;;  %743 = vmatpush3.bf16.msra.mxu1 %v759_v9 }
  0x26   : > { %697 = vmatmul.mubr.bf16.vlgmr.msra.gmra.mrb[0].mxu0 %v762_v10  ;;  %713 = vmatmul.mubr.bf16.vlgmr.msra.gmra.mrb[0].mxu1 %v763_v11 }
  0x27   : > { %700 = vmatprep.mubr.bf16.mxu0 %v764_v12  ;;  %716 = vmatprep.mubr.bf16.mxu1 %v765_v13 }
  0x2e   : > { %701 = vmatmul.mubr.bf16.gmra.mrb[4].mxu0 %v766_v14  ;;  %717 = vmatmul.mubr.bf16.gmra.mrb[4].mxu1 %v767_v15 }
  0x2f   : > { %704 = vmatprep.mubr.bf16.mxu0 %v768_v16  ;;  %720 = vmatprep.mubr.bf16.mxu1 %v769_v17 }
  0x36   : > { %705 = vmatmul.mubr.bf16.gmra.mrb[8].mxu0 %v770_v18  ;;  %721 = vmatmul.mubr.bf16.gmra.mrb[8].mxu1 %v771_v19 }
  0x37   : > { %708 = vmatprep.mubr.bf16.mxu0 %v772_v20  ;;  %724 = vmatprep.mubr.bf16.mxu1 %v773_v21 }
  0x3e   : > { %709 = vmatmul.mubr.bf16.gmra.mrb[12].mxu0 %v774_v22  ;;  %725 = vmatmul.mubr.bf16.gmra.mrb[12].mxu1 %v775_v23 }
  0xf9   : > { %v698_v24 = vpop.f32.mrb[0].mxu0  ;;  %v714_v25 = vpop.f32.mrb[0].mxu1 }
  0xfa   : > { %776 = vtanh.f32 %v698_v24  ;;  %v374_v26 = vpop.f32.mrb[1].mxu0  ;;  %v438_v27 = vpop.f32.mrb[1].mxu1 }
  0xfb   : > { %778 = vtanh.f32 %v714_v25  ;;  %v699_v28 = vpop.f32.mrb[2].mxu0  ;;  %v715_v29 = vpop.f32.mrb[2].mxu1 }
  0xfc   : > { %780 = vtanh.f32 %v374_v26  ;;  %v377_v30 = vpop.f32.mrb[3].mxu0  ;;  %v441_v31 = vpop.f32.mrb[3].mxu1 }
  0xfd   : > { %782 = vtanh.f32 %v438_v27 }
  0xfe   : > { %784 = vtanh.f32 %v699_v28 }
  0xff   : > { %786 = vtanh.f32 %v715_v29 }
 0x100   : > { %788 = vtanh.f32 %v377_v30 }
 0x101   : > { %790 = vtanh.f32 %v441_v31  ;;  %v702_v32 = vpop.f32.mrb[4].mxu0  ;;  %v718_v33 = vpop.f32.mrb[4].mxu1 }
 0x102   : > { %792 = vtanh.f32 %v702_v32  ;;  %v390_v34 = vpop.f32.mrb[5].mxu0  ;;  %v454_v35 = vpop.f32.mrb[5].mxu1 }
 0x103   : > { %794 = vtanh.f32 %v718_v33  ;;  %v703_v36 = vpop.f32.mrb[6].mxu0  ;;  %v719_v37 = vpop.f32.mrb[6].mxu1 }
 0x104   : > { %v777_v38 = vpop.eup %776  ;;  %796 = vtanh.f32 %v390_v34  ;;  %v393_v39 = vpop.f32.mrb[7].mxu0 }
 0x105   : > { %v457_v40 = vpop.f32.mrb[7].mxu1  ;;  %v779_v41 = vpop.eup %778  ;;  %535 = vst [vmem:[%s923_s7 + $0x10] sm:$0xff] %v777_v38  ;;  %798 = vtanh.f32 %v454_v35 }
 0x106   : > { %v781_v42 = vpop.eup %780  ;;  %551 = vst [vmem:[%s923_s7 + $0x90] sm:$0xff] %v779_v41  ;;  %800 = vtanh.f32 %v703_v36 }
 0x107   : > { %v783_v43 = vpop.eup %782  ;;  %533 = vst [vmem:[%s923_s7] sm:$0xff] %v781_v42  ;;  %802 = vtanh.f32 %v719_v37 }
 0x108   : > { %v785_v44 = vpop.eup %784  ;;  %549 = vst [vmem:[%s923_s7 + $0x80] sm:$0xff] %v783_v43  ;;  %804 = vtanh.f32 %v393_v39 }
 0x109   : > { %v787_v45 = vpop.eup %786  ;;  %536 = vst [vmem:[%s923_s7 + $0x18] sm:$0xff] %v785_v44  ;;  %806 = vtanh.f32 %v457_v40  ;;  %v706_v46 = vpop.f32.mrb[8].mxu0 }
 0x10a   : > { %v722_v47 = vpop.f32.mrb[8].mxu1  ;;  %v789_v48 = vpop.eup %788  ;;  %552 = vst [vmem:[%s923_s7 + $0x98] sm:$0xff] %v787_v45  ;;  %808 = vtanh.f32 %v706_v46 }
 0x10b   : > { %v406_v49 = vpop.f32.mrb[9].mxu0  ;;  %v470_v50 = vpop.f32.mrb[9].mxu1  ;;  %534 = vst [vmem:[%s923_s7 + $0x8] sm:$0xff] %v789_v48  ;;  %810 = vtanh.f32 %v722_v47 }
 0x10c   : > { %v791_v51 = vpop.eup %790  ;;  %v707_v52 = vpop.f32.mrb[10].mxu0  ;;  %812 = vtanh.f32 %v406_v49 }
 0x10d   : > { %v723_v53 = vpop.f32.mrb[10].mxu1  ;;  %v793_v54 = vpop.eup %792  ;;  %550 = vst [vmem:[%s923_s7 + $0x88] sm:$0xff] %v791_v51  ;;  %814 = vtanh.f32 %v470_v50 }
 0x10e   : > { %v409_v55 = vpop.f32.mrb[11].mxu0  ;;  %v473_v56 = vpop.f32.mrb[11].mxu1  ;;  %539 = vst [vmem:[%s923_s7 + $0x30] sm:$0xff] %v793_v54  ;;  %816 = vtanh.f32 %v707_v52 }
 0x10f   : > { %v795_v57 = vpop.eup %794  ;;  %818 = vtanh.f32 %v723_v53 }
 0x110   : > { %v797_v58 = vpop.eup %796  ;;  %555 = vst [vmem:[%s923_s7 + $0xb0] sm:$0xff] %v795_v57  ;;  %820 = vtanh.f32 %v409_v55 }
 0x111   : > { %v799_v59 = vpop.eup %798  ;;  %537 = vst [vmem:[%s923_s7 + $0x20] sm:$0xff] %v797_v58  ;;  %822 = vtanh.f32 %v473_v56  ;;  %v710_v62 = vpop.f32.mrb[12].mxu0 }
 0x112   : > { %v801_v60 = vpop.eup %800  ;;  %553 = vst [vmem:[%s923_s7 + $0xa0] sm:$0xff] %v799_v59  ;;  %v726_v63 = vpop.f32.mrb[12].mxu1  ;;  %824 = vtanh.f32 %v710_v62 }
 0x113   : > { %v803_v61 = vpop.eup %802  ;;  %540 = vst [vmem:[%s923_s7 + $0x38] sm:$0xff] %v801_v60  ;;  %v422_v1 = vpop.f32.mrb[13].mxu0  ;;  %826 = vtanh.f32 %v726_v63 }
 0x114   : > { %v805_v0 = vpop.eup %804  ;;  %556 = vst [vmem:[%s923_s7 + $0xb8] sm:$0xff] %v803_v61  ;;  %v486_v2 = vpop.f32.mrb[13].mxu1  ;;  %828 = vtanh.f32 %v422_v1 }
 0x115   : > { %v807_v3 = vpop.eup %806  ;;  %538 = vst [vmem:[%s923_s7 + $0x28] sm:$0xff] %v805_v0  ;;  %v711_v4 = vpop.f32.mrb[14].mxu0  ;;  %830 = vtanh.f32 %v486_v2 }
 0x116   : > { %v727_v5 = vpop.f32.mrb[14].mxu1  ;;  %v809_v6 = vpop.eup %808  ;;  %554 = vst [vmem:[%s923_s7 + $0xa8] sm:$0xff] %v807_v3  ;;  %832 = vtanh.f32 %v711_v4 }
 0x117   : > { %v425_v7 = vpop.f32.mrb[15].mxu0  ;;  %v489_v8 = vpop.f32.mrb[15].mxu1  ;;  %543 = vst [vmem:[%s923_s7 + $0x50] sm:$0xff] %v809_v6  ;;  %834 = vtanh.f32 %v727_v5 }
 0x118   : > { %v811_v9 = vpop.eup %810  ;;  %836 = vtanh.f32 %v425_v7 }
 0x119   : > { %v813_v10 = vpop.eup %812  ;;  %559 = vst [vmem:[%s923_s7 + $0xd0] sm:$0xff] %v811_v9  ;;  %838 = vtanh.f32 %v489_v8 }
 0x11a   : > { %v815_v11 = vpop.eup %814  ;;  %541 = vst [vmem:[%s923_s7 + $0x40] sm:$0xff] %v813_v10 }
 0x11b   : > { %v817_v12 = vpop.eup %816  ;;  %557 = vst [vmem:[%s923_s7 + $0xc0] sm:$0xff] %v815_v11 }
 0x11c   : > { %v819_v13 = vpop.eup %818  ;;  %544 = vst [vmem:[%s923_s7 + $0x58] sm:$0xff] %v817_v12 }
 0x11d   : > { %v821_v14 = vpop.eup %820  ;;  %560 = vst [vmem:[%s923_s7 + $0xd8] sm:$0xff] %v819_v13 }
 0x11e   : > { %v823_v15 = vpop.eup %822  ;;  %542 = vst [vmem:[%s923_s7 + $0x48] sm:$0xff] %v821_v14 }
 0x11f   : > { %v825_v16 = vpop.eup %824  ;;  %558 = vst [vmem:[%s923_s7 + $0xc8] sm:$0xff] %v823_v15 }
 0x120   : > { %v827_v17 = vpop.eup %826  ;;  %547 = vst [vmem:[%s923_s7 + $0x70] sm:$0xff] %v825_v16 }
 0x121   : > { %v829_v18 = vpop.eup %828  ;;  %563 = vst [vmem:[%s923_s7 + $0xf0] sm:$0xff] %v827_v17 }
 0x122   : > { %v831_v19 = vpop.eup %830  ;;  %545 = vst [vmem:[%s923_s7 + $0x60] sm:$0xff] %v829_v18 }
 0x123   : > { %v833_v20 = vpop.eup %832  ;;  %561 = vst [vmem:[%s923_s7 + $0xe0] sm:$0xff] %v831_v19 }
 0x124   : > { %v835_v21 = vpop.eup %834  ;;  %548 = vst [vmem:[%s923_s7 + $0x78] sm:$0xff] %v833_v20 }
 0x125   : > { %v837_v22 = vpop.eup %836  ;;  %564 = vst [vmem:[%s923_s7 + $0xf8] sm:$0xff] %v835_v21 }
 0x126   : > { %v839_v23 = vpop.eup %838  ;;  %546 = vst [vmem:[%s923_s7 + $0x68] sm:$0xff] %v837_v22 }
 0x127   : > { %562 = vst [vmem:[%s923_s7 + $0xe8] sm:$0xff] %v839_v23 }
 0x128 PF: > { %s12_s9 = sadd.s32 1, %s846_s9  }
 0x129   : > { %p9_p4 = scmp.ge.s32.totalorder %s12_s9, 11  }
 0x12b   :  { %11 = sbr.rel (!%p9_p4) target bundleno = 1 (0x1), region = 58 }

</bundles_post_ra>
